<compile_context>
chip_gen: v6e
topology: v6e:2x2x1
jax: 0.10.0
libtpu: 0.0.40
codegen_flags: <defaults>
</compile_context>

<pallas_src>
import math
from functools import partial

import jax
import jax.numpy as jnp
from jax.experimental import pallas as pl
from jax.experimental.pallas import tpu as pltpu

# ----------------------------- model config ---------------------------------
N_FRAMES = 4            # number of "video frames" (len(raw_data))
WRAP_BS = N_FRAMES      # HFImageModelWrapper batch_size (all frames -> grid=(1,))
C, H, W = 3, 16, 16     # RGB images (NCHW)
PATCH = 8
GRID_HW = H // PATCH
NUM_PATCHES = GRID_HW * GRID_HW          # 4
PATCH_DIM = C * PATCH * PATCH            # 192
SEQ = NUM_PATCHES + 1                    # CLS + patches = 5 (real tokens)
SEQ_PAD = 8                              # padded to a full sublane tile
HIDDEN = 32
NUM_HEADS = 2
HEAD_DIM = HIDDEN // NUM_HEADS
MLP_DIM = 64
LN_EPS = 1e-6
SLAB_LANES = 128                         # lane width of the packed weight slab
OUT_LANES = 128                          # lane width of the lane-dense output

# rows of the packed [9, HIDDEN] per-channel parameter block inside the slab
_LN1G, _LN1B, _LN2G, _LN2B, _LNFG, _LNFB, _BO, _B2, _BPL = range(9)


def _round8(n):
    return -(-n // 8) * 8


def _slab_layout(batch_size):
    """Row offsets of each parameter piece inside the packed [R, 128] slab."""
    rows = batch_size * SEQ_PAD
    order = [
        ("wqkv", HIDDEN, 3 * HIDDEN),     # fused QKV weight (Q cols pre-scaled)
        ("wo",   HIDDEN, HIDDEN),
        ("w1",   HIDDEN, MLP_DIM),
        ("w2",   MLP_DIM, HIDDEN),
        ("wpl",  HIDDEN, HIDDEN),
        ("pos",  rows, HIDDEN),           # CLS/bias/pos fold, tiled over frames
        ("mask", rows, rows),             # additive attn mask (frames + pad keys)
        ("bqkv", 1, 3 * HIDDEN),
        ("b1",   1, MLP_DIM),
        ("vec",  9, HIDDEN),              # ln1g..bpl, see indices above
    ]
    layout, off = {}, 0
    for name, nr, nc in order:
        assert nc <= SLAB_LANES
        layout[name] = (off, nr, nc)
        off += _round8(nr)
    return layout, off


# ------------------------------ Pallas kernel --------------------------------
def _vit_batch_kernel(layout, p_ref, wp_ref, slab_ref, out_ref):
    rows = out_ref.shape[0]                     # batch_size * SEQ_PAD
    bs = rows // SEQ_PAD

    def piece(name):
        o, nr, nc = layout[name]
        return slab_ref[o:o + nr, 0:nc]         # static view -> free slice

    vec = piece("vec")                          # [9, HIDDEN] packed vectors

    def vrow(i):
        return vec[i:i + 1, :]                  # [1, HIDDEN]

    def layernorm(x, g, b):
        mu = jnp.mean(x, axis=-1, keepdims=True)
        var = jnp.mean(jnp.square(x - mu), axis=-1, keepdims=True)
        return (x - mu) * jax.lax.rsqrt(var + LN_EPS) * g + b

    # ---- patch embedding: one flattened 2-D matmul -------------------------
    # CLS token, conv bias, and position embeddings are pre-folded into "pos"
    # (token 0's patch row is zero, pad rows are zero -> the fold is exact).
    x = jnp.dot(p_ref[...], wp_ref[...],
                preferred_element_type=jnp.float32) + piece("pos")   # [rows, H]

    # ---- transformer encoder block: attention -------------------------------
    h = layernorm(x, vrow(_LN1G), vrow(_LN1B))
    qkv = jnp.dot(h, piece("wqkv"),
                  preferred_element_type=jnp.float32) + piece("bqkv")  # [rows,3H]
    mask = piece("mask")                                               # [rows,rows]

    ctx_heads = []
    for hh in range(NUM_HEADS):
        lo = hh * HEAD_DIM
        qh = qkv[:, lo:lo + HEAD_DIM]                              # [rows, hd]
        kh = qkv[:, HIDDEN + lo:HIDDEN + lo + HEAD_DIM]
        vh = qkv[:, 2 * HIDDEN + lo:2 * HIDDEN + lo + HEAD_DIM]
        # scale is folded into the Q columns of wqkv/bqkv host-side
        s = jax.lax.dot_general(qh, kh, (((1,), (1,)), ((), ())),
                                preferred_element_type=jnp.float32) + mask
        s = s - jnp.max(s, axis=-1, keepdims=True)
        p = jnp.exp(s)
        # TODO(synk): approx reciprocal deviates slightly from an exact divide.
        p = p * pl.reciprocal(jnp.sum(p, axis=-1, keepdims=True), approx=True)
        ctx_heads.append(jnp.dot(p, vh, preferred_element_type=jnp.float32))
    ctx = jnp.concatenate(ctx_heads, axis=-1)                       # [rows, H]
    x = x + jnp.dot(ctx, piece("wo"),
                    preferred_element_type=jnp.float32) + vrow(_BO)

    # ---- transformer encoder block: MLP -------------------------------------
    h = layernorm(x, vrow(_LN2G), vrow(_LN2B))
    m = jnp.dot(h, piece("w1"), preferred_element_type=jnp.float32) + piece("b1")
    # GELU (tanh approximation) -> EUP
    # TODO(synk): HF ViT default is exact erf-based GELU; tanh approx differs ~1e-3.
    m = 0.5 * m * (1.0 + jnp.tanh(0.7978845608028654 * (m + 0.044715 * m * m * m)))
    m = jnp.dot(m, piece("w2"), preferred_element_type=jnp.float32) + vrow(_B2)
    x = x + m

    hidden = layernorm(x, vrow(_LNFG), vrow(_LNFB))                 # [rows, H]

    # ---- pooler: one flattened 2-D matmul on the CLS rows --------------------
    cls2d = hidden.reshape(bs, SEQ_PAD, HIDDEN)[:, 0, :]            # [bs, H]
    pooled = jnp.tanh(jnp.dot(cls2d, piece("wpl"),
                              preferred_element_type=jnp.float32) + vrow(_BPL))
    pooled_rows = jnp.broadcast_to(
        pooled[:, None, :], (bs, SEQ_PAD, HIDDEN)).reshape(rows, HIDDEN)

    # ---- merge pooler into pad row SEQ in-register; ONE lane-dense store ----
    tok = jax.lax.broadcasted_iota(jnp.int32, (rows, 1), 0) % SEQ_PAD
    merged = jnp.where(tok == SEQ, pooled_rows, hidden)             # [rows, H]
    pad = jnp.zeros((rows, OUT_LANES - HIDDEN), merged.dtype)
    out_ref[...] = jnp.concatenate([merged, pad], axis=-1).astype(out_ref.dtype)


# ------------------------------ glue / wrapper --------------------------------
def _extract_patches(pixel_values):
    """NCHW -> [N*SEQ_PAD, PATCH_DIM]; zero rows at token 0 (CLS slot) and pads."""
    n = pixel_values.shape[0]
    x = pixel_values.reshape(n, C, GRID_HW, PATCH, GRID_HW, PATCH)
    x = x.transpose(0, 2, 4, 1, 3, 5)                      # [N, gh, gw, C, p, p]
    patches = x.reshape(n, NUM_PATCHES, PATCH_DIM)
    pad_cls = jnp.zeros((n, 1, PATCH_DIM), patches.dtype)
    pad_tail = jnp.zeros((n, SEQ_PAD - SEQ, PATCH_DIM), patches.dtype)
    return jnp.concatenate([pad_cls, patches, pad_tail], axis=1).reshape(
        n * SEQ_PAD, PATCH_DIM)


def init_params(key):
    ks = jax.random.split(key, 16)
    s = 0.02

    def nrm(k, shape):
        return s * jax.random.normal(k, shape, jnp.float32)

    return dict(
        wp=nrm(ks[0], (PATCH_DIM, HIDDEN)), bp=jnp.zeros((1, HIDDEN), jnp.float32),
        cls=nrm(ks[1], (1, 1, HIDDEN)), pos=nrm(ks[2], (1, SEQ, HIDDEN)),
        ln1g=jnp.ones((1, HIDDEN), jnp.float32), ln1b=jnp.zeros((1, HIDDEN), jnp.float32),
        wq=nrm(ks[3], (HIDDEN, HIDDEN)), bq=jnp.zeros((1, HIDDEN), jnp.float32),
        wk=nrm(ks[4], (HIDDEN, HIDDEN)), bk=jnp.zeros((1, HIDDEN), jnp.float32),
        wv=nrm(ks[5], (HIDDEN, HIDDEN)), bv=jnp.zeros((1, HIDDEN), jnp.float32),
        wo=nrm(ks[6], (HIDDEN, HIDDEN)), bo=jnp.zeros((1, HIDDEN), jnp.float32),
        ln2g=jnp.ones((1, HIDDEN), jnp.float32), ln2b=jnp.zeros((1, HIDDEN), jnp.float32),
        w1=nrm(ks[7], (HIDDEN, MLP_DIM)), b1=jnp.zeros((1, MLP_DIM), jnp.float32),
        w2=nrm(ks[8], (MLP_DIM, HIDDEN)), b2=jnp.zeros((1, HIDDEN), jnp.float32),
        lnfg=jnp.ones((1, HIDDEN), jnp.float32), lnfb=jnp.zeros((1, HIDDEN), jnp.float32),
        wpl=nrm(ks[9], (HIDDEN, HIDDEN)), bpl=jnp.zeros((1, HIDDEN), jnp.float32),
    )


def _pack_weights(params, batch_size):
    """Fold CLS/bias into a pos slab, fuse+pre-scale QKV, build the attention
    mask, and pack everything small into ONE lane-padded [R, 128] slab."""
    p = params
    rows = batch_size * SEQ_PAD
    layout, total = _slab_layout(batch_size)

    scale = 1.0 / math.sqrt(HEAD_DIM)
    wqkv = jnp.concatenate([p["wq"] * scale, p["wk"], p["wv"]], axis=1)  # [H, 3H]
    bqkv = jnp.concatenate([p["bq"] * scale, p["bk"], p["bv"]], axis=1)  # [1, 3H]

    # token 0 (CLS slot): patch row is zero -> value = pos[0] + cls (no bp)
    # tokens 1..SEQ-1:    value = patches@wp + bp + pos[s]
    # pad tokens:         value = 0 (masked out of attention, sliced off outside)
    pos_eff = jnp.concatenate([
        (p["cls"][0, 0] + p["pos"][0, 0])[None, :],
        p["pos"][0, 1:] + p["bp"],
        jnp.zeros((SEQ_PAD - SEQ, HIDDEN), jnp.float32),
    ], axis=0)                                                   # [SEQ_PAD, H]
    pos_tiled = jnp.tile(pos_eff[None], (batch_size, 1, 1)).reshape(rows, HIDDEN)

    # additive attention mask: block-diagonal over frames AND pad-key mask
    frame = jnp.arange(rows) // SEQ_PAD
    tok = jnp.arange(rows) % SEQ_PAD
    valid = (frame[:, None] == frame[None, :]) & (tok[None, :] < SEQ)
    mask = jnp.where(valid, 0.0, -1e9).astype(jnp.float32)       # [rows, rows]

    vec = jnp.concatenate([p["ln1g"], p["ln1b"], p["ln2g"], p["ln2b"],
                           p["lnfg"], p["lnfb"], p["bo"], p["b2"], p["bpl"]],
                          axis=0)                                # [9, H]

    pieces = dict(wqkv=wqkv, wo=p["wo"], w1=p["w1"], w2=p["w2"], wpl=p["wpl"],
                  pos=pos_tiled, mask=mask, bqkv=bqkv, b1=p["b1"], vec=vec)

    slab = jnp.zeros((total, SLAB_LANES), jnp.float32)
    for name, val in pieces.items():
        o, nr, nc = layout[name]
        slab = slab.at[o:o + nr, 0:nc].set(val)
    return slab, layout


@partial(jax.jit, static_argnames=("batch_size",))
def hf_image_model_wrapper_forward(pixel_values, params, batch_size=WRAP_BS):
    """Equivalent of HFImageModelWrapper.forward: batch frames, run the image
    model, concatenate per-batch outputs (concat is done by the output BlockSpec).
    Default batch_size == n_frames collapses the grid to a single step; on v7x
    use batch_size = n_frames // 2 to shard across the two TensorCores."""
    n = pixel_values.shape[0]
    assert n % batch_size == 0
    num_batches = n // batch_size
    rows = batch_size * SEQ_PAD
    assert rows <= SLAB_LANES, "attention mask must fit in the 128-lane slab"

    patches = _extract_patches(pixel_values)          # [N*SEQ_PAD, PATCH_DIM]
    slab, layout = _pack_weights(params, batch_size)  # [R, 128]
    wp = params["wp"]                                 # [PATCH_DIM, HIDDEN]

    out = pl.pallas_call(
        partial(_vit_batch_kernel, layout),
        out_shape=jax.ShapeDtypeStruct((n * SEQ_PAD, OUT_LANES), jnp.float32),
        grid=(num_batches,),
        in_specs=[
            pl.BlockSpec((rows, PATCH_DIM), lambda i: (i, 0)),   # per-batch patches
            pl.BlockSpec((PATCH_DIM, HIDDEN), lambda i: (0, 0)),  # wp (replicated)
            pl.BlockSpec(slab.shape, lambda i: (0, 0)),           # packed slab
        ],
        out_specs=pl.BlockSpec((rows, OUT_LANES), lambda i: (i, 0)),
        compiler_params=pltpu.CompilerParams(
            dimension_semantics=("parallel",)),
    )(patches, wp, slab)

    out3 = out.reshape(n, SEQ_PAD, OUT_LANES)
    return {
        "last_hidden_state": out3[:, :SEQ, :HIDDEN],   # [N, SEQ, HIDDEN]
        "pooler_output": out3[:, SEQ, :HIDDEN],        # [N, HIDDEN] (pad row SEQ)
    }


if __name__ == "__main__":
    key = jax.random.PRNGKey(0)
    k_pix, k_par = jax.random.split(key)
    # stand-in for `raw_data` after decoding + extractor: NCHW pixel tensor
    pixel_values = jax.random.normal(k_pix, (N_FRAMES, C, H, W), jnp.float32)
    params = init_params(k_par)

    outputs = hf_image_model_wrapper_forward(pixel_values, params, batch_size=WRAP_BS)
    jax.block_until_ready(outputs)

    assert outputs["last_hidden_state"].shape == (N_FRAMES, SEQ, HIDDEN)
    assert outputs["pooler_output"].shape == (N_FRAMES, HIDDEN)
    print("KERNEL_OK")
</pallas_src>

<mosaic_0001>
module attributes {stable_mosaic.version = 11 : i64} {
  func.func @_vit_batch_kernel(%arg0: i32, %arg1: memref<32x192xf32, #tpu.memory_space<vmem>>, %arg2: memref<192x32xf32, #tpu.memory_space<vmem>>, %arg3: memref<288x128xf32, #tpu.memory_space<vmem>>, %arg4: memref<32x128xf32, #tpu.memory_space<vmem>>) attributes {dimension_semantics = [#tpu.dimension_semantics<parallel>], iteration_bounds = array<i64: 1>, scalar_prefetch = 0 : i64, scratch_operands = 0 : i64, tpu.core_type = #tpu.core_type<tc>, window_params = [{transform_indices = @transform_0, window_bounds = array<i64: 32, 192>}, {pipeline_mode = #tpu.pipeline_mode<synchronous>, transform_indices = @transform_1, window_bounds = array<i64: 192, 32>}, {pipeline_mode = #tpu.pipeline_mode<synchronous>, transform_indices = @transform_2, window_bounds = array<i64: 288, 128>}, {transform_indices = @transform_3, window_bounds = array<i64: 32, 128>}]} {
    %c272 = arith.constant 272 : index
    %c0 = arith.constant 0 : index
    %0 = vector.load %arg3[%c272, %c0] : memref<288x128xf32, #tpu.memory_space<vmem>>, vector<9x32xf32>
    %c0_0 = arith.constant 0 : index
    %c0_1 = arith.constant 0 : index
    %1 = vector.load %arg1[%c0_0, %c0_1] : memref<32x192xf32, #tpu.memory_space<vmem>>, vector<32x192xf32>
    %c0_2 = arith.constant 0 : index
    %c0_3 = arith.constant 0 : index
    %2 = vector.load %arg2[%c0_2, %c0_3] : memref<192x32xf32, #tpu.memory_space<vmem>>, vector<192x32xf32>
    %cst = arith.constant dense<0.000000e+00> : vector<32x32xf32>
    %3 = tpu.matmul %1, %2, %cst {dimension_numbers = #tpu.dot_dimension_numbers<[1], [0], [0], [1], [0, 0, 1, 1], [], []>} : vector<32x192xf32>, vector<192x32xf32>, vector<32x32xf32> -> vector<32x32xf32>
    %c192 = arith.constant 192 : index
    %c0_4 = arith.constant 0 : index
    %4 = vector.load %arg3[%c192, %c0_4] : memref<288x128xf32, #tpu.memory_space<vmem>>, vector<32x32xf32>
    %5 = arith.addf %3, %4 : vector<32x32xf32>
    %6 = vector.extract_strided_slice %0 {offsets = [0, 0], sizes = [1, 32], strides = [1, 1]} : vector<9x32xf32> to vector<1x32xf32>
    %7 = vector.extract_strided_slice %0 {offsets = [1, 0], sizes = [1, 32], strides = [1, 1]} : vector<9x32xf32> to vector<1x32xf32>
    %cst_5 = arith.constant dense<0.000000e+00> : vector<32xf32>
    %8 = vector.multi_reduction <add>, %5, %cst_5 [1] : vector<32x32xf32> to vector<32xf32>
    %9 = vector.shape_cast %8 : vector<32xf32> to vector<32x1xf32>
    %cst_6 = arith.constant 3.200000e+01 : f32
    %10 = vector.broadcast %cst_6 : f32 to vector<32x1xf32>
    %11 = arith.divf %9, %10 : vector<32x1xf32>
    %12 = vector.broadcast %11 : vector<32x1xf32> to vector<32x32xf32>
    %13 = arith.subf %5, %12 : vector<32x32xf32>
    %14 = arith.mulf %13, %13 : vector<32x32xf32>
    %cst_7 = arith.constant dense<0.000000e+00> : vector<32xf32>
    %15 = vector.multi_reduction <add>, %14, %cst_7 [1] : vector<32x32xf32> to vector<32xf32>
    %16 = vector.shape_cast %15 : vector<32xf32> to vector<32x1xf32>
    %cst_8 = arith.constant 3.200000e+01 : f32
    %17 = vector.broadcast %cst_8 : f32 to vector<32x1xf32>
    %18 = arith.divf %16, %17 : vector<32x1xf32>
    %19 = vector.broadcast %11 : vector<32x1xf32> to vector<32x32xf32>
    %20 = arith.subf %5, %19 : vector<32x32xf32>
    %cst_9 = arith.constant 9.99999997E-7 : f32
    %21 = vector.broadcast %cst_9 : f32 to vector<32x1xf32>
    %22 = arith.addf %18, %21 : vector<32x1xf32>
    %23 = math.rsqrt %22 : vector<32x1xf32>
    %24 = vector.broadcast %23 : vector<32x1xf32> to vector<32x32xf32>
    %25 = arith.mulf %20, %24 : vector<32x32xf32>
    %26 = vector.broadcast %6 : vector<1x32xf32> to vector<32x32xf32>
    %27 = arith.mulf %25, %26 : vector<32x32xf32>
    %28 = vector.broadcast %7 : vector<1x32xf32> to vector<32x32xf32>
    %29 = arith.addf %27, %28 : vector<32x32xf32>
    %c0_10 = arith.constant 0 : index
    %c0_11 = arith.constant 0 : index
    %30 = vector.load %arg3[%c0_10, %c0_11] : memref<288x128xf32, #tpu.memory_space<vmem>>, vector<32x96xf32>
    %cst_12 = arith.constant dense<0.000000e+00> : vector<32x96xf32>
    %31 = tpu.matmul %29, %30, %cst_12 {dimension_numbers = #tpu.dot_dimension_numbers<[1], [0], [0], [1], [0, 0, 1, 1], [], []>} : vector<32x32xf32>, vector<32x96xf32>, vector<32x96xf32> -> vector<32x96xf32>
    %c256 = arith.constant 256 : index
    %c0_13 = arith.constant 0 : index
    %32 = vector.load %arg3[%c256, %c0_13] : memref<288x128xf32, #tpu.memory_space<vmem>>, vector<1x96xf32>
    %33 = vector.broadcast %32 : vector<1x96xf32> to vector<32x96xf32>
    %34 = arith.addf %31, %33 : vector<32x96xf32>
    %c224 = arith.constant 224 : index
    %c0_14 = arith.constant 0 : index
    %35 = vector.load %arg3[%c224, %c0_14] : memref<288x128xf32, #tpu.memory_space<vmem>>, vector<32x32xf32>
    %36 = vector.extract_strided_slice %34 {offsets = [0, 0], sizes = [32, 16], strides = [1, 1]} : vector<32x96xf32> to vector<32x16xf32>
    %37 = vector.extract_strided_slice %34 {offsets = [0, 32], sizes = [32, 16], strides = [1, 1]} : vector<32x96xf32> to vector<32x16xf32>
    %38 = vector.extract_strided_slice %34 {offsets = [0, 64], sizes = [32, 16], strides = [1, 1]} : vector<32x96xf32> to vector<32x16xf32>
    %cst_15 = arith.constant dense<0.000000e+00> : vector<32x32xf32>
    %39 = tpu.matmul %36, %37, %cst_15 {dimension_numbers = #tpu.dot_dimension_numbers<[1], [1], [0], [0], [0, 0, 1, 0], [], []>} : vector<32x16xf32>, vector<32x16xf32>, vector<32x32xf32> -> vector<32x32xf32>
    %40 = arith.addf %39, %35 : vector<32x32xf32>
    %cst_16 = arith.constant dense<0xFF800000> : vector<32xf32>
    %41 = vector.multi_reduction <maximumf>, %40, %cst_16 [1] : vector<32x32xf32> to vector<32xf32>
    %42 = vector.shape_cast %41 : vector<32xf32> to vector<32x1xf32>
    %43 = vector.broadcast %42 : vector<32x1xf32> to vector<32x32xf32>
    %44 = arith.subf %40, %43 : vector<32x32xf32>
    %45 = math.exp %44 : vector<32x32xf32>
    %cst_17 = arith.constant dense<0.000000e+00> : vector<32xf32>
    %46 = vector.multi_reduction <add>, %45, %cst_17 [1] : vector<32x32xf32> to vector<32xf32>
    %47 = vector.shape_cast %46 : vector<32xf32> to vector<32x1xf32>
    %48 = tpu.reciprocal %47 {approx = true} : vector<32x1xf32> -> vector<32x1xf32>
    %49 = vector.broadcast %48 : vector<32x1xf32> to vector<32x32xf32>
    %50 = arith.mulf %45, %49 : vector<32x32xf32>
    %cst_18 = arith.constant dense<0.000000e+00> : vector<32x16xf32>
    %51 = tpu.matmul %50, %38, %cst_18 {dimension_numbers = #tpu.dot_dimension_numbers<[1], [0], [0], [1], [0, 0, 1, 1], [], []>} : vector<32x32xf32>, vector<32x16xf32>, vector<32x16xf32> -> vector<32x16xf32>
    %52 = vector.extract_strided_slice %34 {offsets = [0, 16], sizes = [32, 16], strides = [1, 1]} : vector<32x96xf32> to vector<32x16xf32>
    %53 = vector.extract_strided_slice %34 {offsets = [0, 48], sizes = [32, 16], strides = [1, 1]} : vector<32x96xf32> to vector<32x16xf32>
    %54 = vector.extract_strided_slice %34 {offsets = [0, 80], sizes = [32, 16], strides = [1, 1]} : vector<32x96xf32> to vector<32x16xf32>
    %cst_19 = arith.constant dense<0.000000e+00> : vector<32x32xf32>
    %55 = tpu.matmul %52, %53, %cst_19 {dimension_numbers = #tpu.dot_dimension_numbers<[1], [1], [0], [0], [0, 0, 1, 0], [], []>} : vector<32x16xf32>, vector<32x16xf32>, vector<32x32xf32> -> vector<32x32xf32>
    %56 = arith.addf %55, %35 : vector<32x32xf32>
    %cst_20 = arith.constant dense<0xFF800000> : vector<32xf32>
    %57 = vector.multi_reduction <maximumf>, %56, %cst_20 [1] : vector<32x32xf32> to vector<32xf32>
    %58 = vector.shape_cast %57 : vector<32xf32> to vector<32x1xf32>
    %59 = vector.broadcast %58 : vector<32x1xf32> to vector<32x32xf32>
    %60 = arith.subf %56, %59 : vector<32x32xf32>
    %61 = math.exp %60 : vector<32x32xf32>
    %cst_21 = arith.constant dense<0.000000e+00> : vector<32xf32>
    %62 = vector.multi_reduction <add>, %61, %cst_21 [1] : vector<32x32xf32> to vector<32xf32>
    %63 = vector.shape_cast %62 : vector<32xf32> to vector<32x1xf32>
    %64 = tpu.reciprocal %63 {approx = true} : vector<32x1xf32> -> vector<32x1xf32>
    %65 = vector.broadcast %64 : vector<32x1xf32> to vector<32x32xf32>
    %66 = arith.mulf %61, %65 : vector<32x32xf32>
    %cst_22 = arith.constant dense<0.000000e+00> : vector<32x16xf32>
    %67 = tpu.matmul %66, %54, %cst_22 {dimension_numbers = #tpu.dot_dimension_numbers<[1], [0], [0], [1], [0, 0, 1, 1], [], []>} : vector<32x32xf32>, vector<32x16xf32>, vector<32x16xf32> -> vector<32x16xf32>
    %68 = tpu.concatenate %51, %67 in 1 : vector<32x16xf32>, vector<32x16xf32> -> vector<32x32xf32>
    %c32 = arith.constant 32 : index
    %c0_23 = arith.constant 0 : index
    %69 = vector.load %arg3[%c32, %c0_23] : memref<288x128xf32, #tpu.memory_space<vmem>>, vector<32x32xf32>
    %cst_24 = arith.constant dense<0.000000e+00> : vector<32x32xf32>
    %70 = tpu.matmul %68, %69, %cst_24 {dimension_numbers = #tpu.dot_dimension_numbers<[1], [0], [0], [1], [0, 0, 1, 1], [], []>} : vector<32x32xf32>, vector<32x32xf32>, vector<32x32xf32> -> vector<32x32xf32>
    %71 = arith.addf %5, %70 : vector<32x32xf32>
    %72 = vector.extract_strided_slice %0 {offsets = [6, 0], sizes = [1, 32], strides = [1, 1]} : vector<9x32xf32> to vector<1x32xf32>
    %73 = vector.broadcast %72 : vector<1x32xf32> to vector<32x32xf32>
    %74 = arith.addf %71, %73 : vector<32x32xf32>
    %75 = vector.extract_strided_slice %0 {offsets = [2, 0], sizes = [1, 32], strides = [1, 1]} : vector<9x32xf32> to vector<1x32xf32>
    %76 = vector.extract_strided_slice %0 {offsets = [3, 0], sizes = [1, 32], strides = [1, 1]} : vector<9x32xf32> to vector<1x32xf32>
    %cst_25 = arith.constant dense<0.000000e+00> : vector<32xf32>
    %77 = vector.multi_reduction <add>, %74, %cst_25 [1] : vector<32x32xf32> to vector<32xf32>
    %78 = vector.shape_cast %77 : vector<32xf32> to vector<32x1xf32>
    %cst_26 = arith.constant 3.200000e+01 : f32
    %79 = vector.broadcast %cst_26 : f32 to vector<32x1xf32>
    %80 = arith.divf %78, %79 : vector<32x1xf32>
    %81 = vector.broadcast %80 : vector<32x1xf32> to vector<32x32xf32>
    %82 = arith.subf %74, %81 : vector<32x32xf32>
    %83 = arith.mulf %82, %82 : vector<32x32xf32>
    %cst_27 = arith.constant dense<0.000000e+00> : vector<32xf32>
    %84 = vector.multi_reduction <add>, %83, %cst_27 [1] : vector<32x32xf32> to vector<32xf32>
    %85 = vector.shape_cast %84 : vector<32xf32> to vector<32x1xf32>
    %cst_28 = arith.constant 3.200000e+01 : f32
    %86 = vector.broadcast %cst_28 : f32 to vector<32x1xf32>
    %87 = arith.divf %85, %86 : vector<32x1xf32>
    %88 = vector.broadcast %80 : vector<32x1xf32> to vector<32x32xf32>
    %89 = arith.subf %74, %88 : vector<32x32xf32>
    %cst_29 = arith.constant 9.99999997E-7 : f32
    %90 = vector.broadcast %cst_29 : f32 to vector<32x1xf32>
    %91 = arith.addf %87, %90 : vector<32x1xf32>
    %92 = math.rsqrt %91 : vector<32x1xf32>
    %93 = vector.broadcast %92 : vector<32x1xf32> to vector<32x32xf32>
    %94 = arith.mulf %89, %93 : vector<32x32xf32>
    %95 = vector.broadcast %75 : vector<1x32xf32> to vector<32x32xf32>
    %96 = arith.mulf %94, %95 : vector<32x32xf32>
    %97 = vector.broadcast %76 : vector<1x32xf32> to vector<32x32xf32>
    %98 = arith.addf %96, %97 : vector<32x32xf32>
    %c64 = arith.constant 64 : index
    %c0_30 = arith.constant 0 : index
    %99 = vector.load %arg3[%c64, %c0_30] : memref<288x128xf32, #tpu.memory_space<vmem>>, vector<32x64xf32>
    %cst_31 = arith.constant dense<0.000000e+00> : vector<32x64xf32>
    %100 = tpu.matmul %98, %99, %cst_31 {dimension_numbers = #tpu.dot_dimension_numbers<[1], [0], [0], [1], [0, 0, 1, 1], [], []>} : vector<32x32xf32>, vector<32x64xf32>, vector<32x64xf32> -> vector<32x64xf32>
    %c264 = arith.constant 264 : index
    %c0_32 = arith.constant 0 : index
    %101 = vector.load %arg3[%c264, %c0_32] : memref<288x128xf32, #tpu.memory_space<vmem>>, vector<1x64xf32>
    %102 = vector.broadcast %101 : vector<1x64xf32> to vector<32x64xf32>
    %103 = arith.addf %100, %102 : vector<32x64xf32>
    %cst_33 = arith.constant 5.000000e-01 : f32
    %104 = vector.broadcast %cst_33 : f32 to vector<32x64xf32>
    %105 = arith.mulf %104, %103 : vector<32x64xf32>
    %cst_34 = arith.constant 4.471500e-02 : f32
    %106 = vector.broadcast %cst_34 : f32 to vector<32x64xf32>
    %107 = arith.mulf %106, %103 : vector<32x64xf32>
    %108 = arith.mulf %107, %103 : vector<32x64xf32>
    %109 = arith.mulf %108, %103 : vector<32x64xf32>
    %110 = arith.addf %103, %109 : vector<32x64xf32>
    %cst_35 = arith.constant 0.797884583 : f32
    %111 = vector.broadcast %cst_35 : f32 to vector<32x64xf32>
    %112 = arith.mulf %111, %110 : vector<32x64xf32>
    %113 = math.tanh %112 : vector<32x64xf32>
    %cst_36 = arith.constant 1.000000e+00 : f32
    %114 = vector.broadcast %cst_36 : f32 to vector<32x64xf32>
    %115 = arith.addf %114, %113 : vector<32x64xf32>
    %116 = arith.mulf %105, %115 : vector<32x64xf32>
    %c96 = arith.constant 96 : index
    %c0_37 = arith.constant 0 : index
    %117 = vector.load %arg3[%c96, %c0_37] : memref<288x128xf32, #tpu.memory_space<vmem>>, vector<64x32xf32>
    %cst_38 = arith.constant dense<0.000000e+00> : vector<32x32xf32>
    %118 = tpu.matmul %116, %117, %cst_38 {dimension_numbers = #tpu.dot_dimension_numbers<[1], [0], [0], [1], [0, 0, 1, 1], [], []>} : vector<32x64xf32>, vector<64x32xf32>, vector<32x32xf32> -> vector<32x32xf32>
    %119 = vector.extract_strided_slice %0 {offsets = [7, 0], sizes = [1, 32], strides = [1, 1]} : vector<9x32xf32> to vector<1x32xf32>
    %120 = vector.broadcast %119 : vector<1x32xf32> to vector<32x32xf32>
    %121 = arith.addf %118, %120 : vector<32x32xf32>
    %122 = arith.addf %74, %121 : vector<32x32xf32>
    %123 = vector.extract_strided_slice %0 {offsets = [4, 0], sizes = [1, 32], strides = [1, 1]} : vector<9x32xf32> to vector<1x32xf32>
    %124 = vector.extract_strided_slice %0 {offsets = [5, 0], sizes = [1, 32], strides = [1, 1]} : vector<9x32xf32> to vector<1x32xf32>
    %cst_39 = arith.constant dense<0.000000e+00> : vector<32xf32>
    %125 = vector.multi_reduction <add>, %122, %cst_39 [1] : vector<32x32xf32> to vector<32xf32>
    %126 = vector.shape_cast %125 : vector<32xf32> to vector<32x1xf32>
    %cst_40 = arith.constant 3.200000e+01 : f32
    %127 = vector.broadcast %cst_40 : f32 to vector<32x1xf32>
    %128 = arith.divf %126, %127 : vector<32x1xf32>
    %129 = vector.broadcast %128 : vector<32x1xf32> to vector<32x32xf32>
    %130 = arith.subf %122, %129 : vector<32x32xf32>
    %131 = arith.mulf %130, %130 : vector<32x32xf32>
    %cst_41 = arith.constant dense<0.000000e+00> : vector<32xf32>
    %132 = vector.multi_reduction <add>, %131, %cst_41 [1] : vector<32x32xf32> to vector<32xf32>
    %133 = vector.shape_cast %132 : vector<32xf32> to vector<32x1xf32>
    %cst_42 = arith.constant 3.200000e+01 : f32
    %134 = vector.broadcast %cst_42 : f32 to vector<32x1xf32>
    %135 = arith.divf %133, %134 : vector<32x1xf32>
    %136 = vector.broadcast %128 : vector<32x1xf32> to vector<32x32xf32>
    %137 = arith.subf %122, %136 : vector<32x32xf32>
    %cst_43 = arith.constant 9.99999997E-7 : f32
    %138 = vector.broadcast %cst_43 : f32 to vector<32x1xf32>
    %139 = arith.addf %135, %138 : vector<32x1xf32>
    %140 = math.rsqrt %139 : vector<32x1xf32>
    %141 = vector.broadcast %140 : vector<32x1xf32> to vector<32x32xf32>
    %142 = arith.mulf %137, %141 : vector<32x32xf32>
    %143 = vector.broadcast %123 : vector<1x32xf32> to vector<32x32xf32>
    %144 = arith.mulf %142, %143 : vector<32x32xf32>
    %145 = vector.broadcast %124 : vector<1x32xf32> to vector<32x32xf32>
    %146 = arith.addf %144, %145 : vector<32x32xf32>
    %147 = vector.shape_cast %146 : vector<32x32xf32> to vector<4x8x32xf32>
    %148 = vector.extract_strided_slice %147 {offsets = [0, 0, 0], sizes = [4, 1, 32], strides = [1, 1, 1]} : vector<4x8x32xf32> to vector<4x1x32xf32>
    %149 = vector.shape_cast %148 : vector<4x1x32xf32> to vector<4x32xf32>
    %c160 = arith.constant 160 : index
    %c0_44 = arith.constant 0 : index
    %150 = vector.load %arg3[%c160, %c0_44] : memref<288x128xf32, #tpu.memory_space<vmem>>, vector<32x32xf32>
    %cst_45 = arith.constant dense<0.000000e+00> : vector<4x32xf32>
    %151 = tpu.matmul %149, %150, %cst_45 {dimension_numbers = #tpu.dot_dimension_numbers<[1], [0], [0], [1], [0, 0, 1, 1], [], []>} : vector<4x32xf32>, vector<32x32xf32>, vector<4x32xf32> -> vector<4x32xf32>
    %152 = vector.extract_strided_slice %0 {offsets = [8, 0], sizes = [1, 32], strides = [1, 1]} : vector<9x32xf32> to vector<1x32xf32>
    %153 = vector.broadcast %152 : vector<1x32xf32> to vector<4x32xf32>
    %154 = arith.addf %151, %153 : vector<4x32xf32>
    %155 = math.tanh %154 : vector<4x32xf32>
    %156 = vector.shape_cast %155 : vector<4x32xf32> to vector<4x1x32xf32>
    %157 = vector.shape_cast %156 : vector<4x1x32xf32> to vector<4x1x32xf32>
    %158 = vector.broadcast %157 : vector<4x1x32xf32> to vector<4x8x32xf32>
    %159 = vector.shape_cast %158 : vector<4x8x32xf32> to vector<32x32xf32>
    %160 = tpu.iota {dimensions = array<i32: 0>} : vector<32x1xi32>
    %c8_i32 = arith.constant 8 : i32
    %c0_i32 = arith.constant 0 : i32
    %161 = arith.cmpi eq, %c8_i32, %c0_i32 : i32
    %c1_i32 = arith.constant 1 : i32
    %162 = arith.select %161, %c1_i32, %c8_i32 : i32
    %163 = vector.broadcast %162 : i32 to vector<32x1xi32>
    %164 = arith.remsi %160, %163 : vector<32x1xi32>
    %c0_i32_46 = arith.constant 0 : i32
    %165 = vector.broadcast %c0_i32_46 : i32 to vector<32x1xi32>
    %166 = arith.cmpi ne, %164, %165 : vector<32x1xi32>
    %c0_i32_47 = arith.constant 0 : i32
    %167 = vector.broadcast %c0_i32_47 : i32 to vector<32x1xi32>
    %168 = arith.cmpi slt, %164, %167 : vector<32x1xi32>
    %c0_i32_48 = arith.constant 0 : i32
    %169 = arith.cmpi slt, %162, %c0_i32_48 : i32
    %170 = vector.broadcast %169 : i1 to vector<32x1xi1>
    %171 = vector.broadcast %170 : vector<32x1xi1> to vector<32x1xi1>
    %172 = arith.xori %168, %171 : vector<32x1xi1>
    %173 = arith.andi %172, %166 : vector<32x1xi1>
    %174 = vector.broadcast %162 : i32 to vector<32x1xi32>
    %175 = arith.addi %164, %174 : vector<32x1xi32>
    %176 = arith.select %173, %175, %164 : vector<32x1xi1>, vector<32x1xi32>
    %c5_i32 = arith.constant 5 : i32
    %177 = vector.broadcast %c5_i32 : i32 to vector<32x1xi32>
    %178 = arith.cmpi eq, %176, %177 : vector<32x1xi32>
    %179 = vector.shape_cast %178 : vector<32x1xi1> to vector<32x1xi1>
    %180 = vector.broadcast %179 : vector<32x1xi1> to vector<32x32xi1>
    %181 = arith.select %180, %159, %146 : vector<32x32xi1>, vector<32x32xf32>
    %cst_49 = arith.constant 0.000000e+00 : f32
    %182 = vector.broadcast %cst_49 : f32 to vector<32x96xf32>
    %183 = tpu.concatenate %181, %182 in 1 : vector<32x32xf32>, vector<32x96xf32> -> vector<32x128xf32>
    %c0_50 = arith.constant 0 : index
    %c0_51 = arith.constant 0 : index
    %184 = vector.load %arg4[%c0_50, %c0_51] : memref<32x128xf32, #tpu.memory_space<vmem>>, vector<32x128xf32>
    tpu.vector_store %arg4[%c0_50, %c0_51], %183 {strides = array<i32>} : memref<32x128xf32, #tpu.memory_space<vmem>>, vector<32x128xf32>,
    return
  }
  func.func @transform_0(%arg0: i32) -> (i32, i32) {
    %c0_i32 = arith.constant 0 : i32
    %c0_i32_0 = arith.constant 0 : i32
    return %arg0, %c0_i32 : i32, i32
  }
  func.func @transform_1(%arg0: i32) -> (i32, i32) {
    %c0_i32 = arith.constant 0 : i32
    %c0_i32_0 = arith.constant 0 : i32
    %c0_i32_1 = arith.constant 0 : i32
    return %c0_i32, %c0_i32_0 : i32, i32
  }
  func.func @transform_2(%arg0: i32) -> (i32, i32) {
    %c0_i32 = arith.constant 0 : i32
    %c0_i32_0 = arith.constant 0 : i32
    %c0_i32_1 = arith.constant 0 : i32
    return %c0_i32, %c0_i32_0 : i32, i32
  }
  func.func @transform_3(%arg0: i32) -> (i32, i32) {
    %c0_i32 = arith.constant 0 : i32
    %c0_i32_0 = arith.constant 0 : i32
    return %arg0, %c0_i32 : i32, i32
  }
}

</mosaic_0001>

<bundles_post_ra>
// kernel: hf_image_model_wrapper_forward.1
= control target key start
LH: loop header
LB: loop body
LE: loop exit
PB: predicated region body
PF: predicated region fallthrough
CT: control target
= control target key end

     0   :  { %v1939_v0 = vmov 0.0   ;;  %vm52_vm0 = vcmask 523264   ;;  %vm150_vm1 = vcmask 261120   ;;  %vm342_vm2 = vcmask 130048   ;;  %s1940_s13 = smov 96   ;;  %s1941_s21 = smov 64   ;;  %s2447_s1 = inlined_call_operand.vmem [shape: f32[192,32], index: 1, kind: input, shape index: {}]   ;;  %s2448_s0 = inlined_call_operand.vmem [shape: f32[32,192], index: 0, kind: input, shape index: {}]   ;;  %s2449_s2 = inlined_call_operand.vmem [shape: f32[288,128], index: 2, kind: input, shape index: {}]   ;;  %s2450_s3 = inlined_call_operand.vmem [shape: f32[32,128], index: 3, kind: output, shape index: {}]  }
   0x1   :  { %65 = vmatprep.subr.mxu0 %v1939_v0  ;;  %v39_v1 = vld [vmem:[%s2447_s1 + $0x78] sm:$0xff]  ;;  %v38_v2 = vld [vmem:[%s2447_s1 + $0x70] sm:$0xff]  ;;  %v37_v3 = vld [vmem:[%s2447_s1 + $0x68] sm:$0xff]  ;;  %s1942_s22 = smov 80   ;;  %s1943_s23 = smov 112   ;;  %vm1946_vm3 = vmmov 0  }
   0x2   :  { %66 = vmatpush1.msra.mxu0 %v39_v1  ;;  %v36_v4 = vld [vmem:[%s2447_s1 + $0x60] sm:$0xff]  ;;  %v35_v5 = vld [vmem:[%s2447_s1 + $0x58] sm:$0xff]  ;;  %v34_v6 = vld [vmem:[%s2447_s1 + $0x50] sm:$0xff]  ;;  %s1944_s24 = smov 48   ;;  %s1945_s5 = smov 16   ;;  %vm1404_vm4 = vcmask 1041409  }
   0x3   :  { %67 = vmatprep.subr.mxu0 %v1939_v0  ;;  %v17_v7 = vld [vmem:[%s2448_s0 + $0x8] sm:$0xff]  ;;  %v32_v9 = vld [vmem:[%s2447_s1 + $0x40] sm:$0xff]  ;;  %v31_v10 = vld [vmem:[%s2447_s1 + $0x38] sm:$0xff]  ;;  %vm1407_vm5 = vcmask 1042434   ;;  %vm1410_vm6 = vcmask 1043459  }
   0x4   :  { %68 = vmatpush1.msra.mxu0 %v38_v2  ;;  %1611 = vmatprep.mubr.msk.f32.mxu0 %vm52_vm0, %v17_v7  ;;  %v33_v8 = vld [vmem:[%s2447_s1 + $0x48] sm:$0xff]  ;;  %v30_v11 = vld [vmem:[%s2447_s1 + $0x30] sm:$0xff]  ;;  %v28_v13 = vld [vmem:[%s2447_s1 + $0x20] sm:$0xff] }
   0x5   :  { %69 = vmatprep.subr.mxu0 %v1939_v0  ;;  %v29_v12 = vld [vmem:[%s2447_s1 + $0x28] sm:$0xff]  ;;  %v27_v14 = vld [vmem:[%s2447_s1 + $0x18] sm:$0xff]  ;;  %v26_v15 = vld [vmem:[%s2447_s1 + $0x10] sm:$0xff] }
   0x6   :  { %70 = vmatpush1.msra.mxu0 %v37_v3  ;;  %v25_v16 = vld [vmem:[%s2447_s1 + $0x8] sm:$0xff]  ;;  %v24_v17 = vld [vmem:[%s2447_s1] sm:$0xff]  ;;  %v47_v18 = vld [vmem:[%s2447_s1 + $0xb8] sm:$0xff] }
   0x7   :  { %71 = vmatprep.subr.mxu0 %v1939_v0  ;;  %v46_v19 = vld [vmem:[%s2447_s1 + $0xb0] sm:$0xff]  ;;  %v45_v20 = vld [vmem:[%s2447_s1 + $0xa8] sm:$0xff]  ;;  %v44_v21 = vld [vmem:[%s2447_s1 + $0xa0] sm:$0xff] }
   0x8   :  { %72 = vmatpush1.msra.mxu0 %v36_v4  ;;  %v43_v22 = vld [vmem:[%s2447_s1 + $0x98] sm:$0xff]  ;;  %v42_v23 = vld [vmem:[%s2447_s1 + $0x90] sm:$0xff]  ;;  %v41_v24 = vld [vmem:[%s2447_s1 + $0x88] sm:$0xff] }
   0x9   :  { %73 = vmatprep.subr.mxu0 %v1939_v0  ;;  %v40_v25 = vld [vmem:[%s2447_s1 + $0x80] sm:$0xff]  ;;  %v19_v27 = vld [vmem:[%s2448_s0 + $0x18] sm:$0xff]  ;;  %v18_v28 = vld [vmem:[%s2448_s0 + $0x10] sm:$0xff] }
   0xa   :  { %74 = vmatpush1.msra.mxu0 %v35_v5  ;;  %v16_v26 = vld [vmem:[%s2448_s0] sm:$0xff]  ;;  %v21_v29 = vld [vmem:[%s2448_s0 + $0x28] sm:$0xff]  ;;  %v23_v31 = vld [vmem:[%s2448_s0 + $0x38] sm:$0xff] }
   0xb   :  { %75 = vmatprep.subr.mxu0 %v1939_v0  ;;  %v20_v30 = vld [vmem:[%s2448_s0 + $0x20] sm:$0xff]  ;;  %v22_v32 = vld [vmem:[%s2448_s0 + $0x30] sm:$0xff]  ;;  %v49_v37 = vld [vmem:[%s2449_s2 + $0xc8] sm:$0xff] }
   0xc   :  { %76 = vmatpush1.msra.mxu0 %v34_v6  ;;  %v48_v33 = vld [vmem:[%s2449_s2 + $0xc0] sm:$0xff]  ;;  %v50_v42 = vld [vmem:[%s2449_s2 + $0xd0] sm:$0xff]  ;;  %v51_v47 = vld [vmem:[%s2449_s2 + $0xd8] sm:$0xff] }
   0xd   :  { %77 = vmatprep.subr.mxu0 %v1939_v0 }
   0xe   :  { %78 = vmatpush1.msra.mxu0 %v33_v8 }
   0xf   :  { %79 = vmatprep.subr.mxu0 %v1939_v0 }
  0x10   :  { %80 = vmatpush1.msra.mxu0 %v32_v9 }
  0x11   :  { %81 = vmatprep.subr.mxu0 %v1939_v0 }
  0x12   :  { %82 = vmatpush1.msra.mxu0 %v31_v10  ;;  %v223_v10 = vld [vmem:[%s2449_s2 + $0x18] sm:$0xff] }
  0x13   :  { %83 = vmatprep.subr.mxu0 %v1939_v0  ;;  %1732 = vmatprep.subr.mxu1 %v223_v10 }
  0x14   :  { %84 = vmatpush1.msra.mxu0 %v30_v11  ;;  %v222_v11 = vld [vmem:[%s2449_s2 + $0x10] sm:$0xff]  ;;  %1733 = vmatpush3.msra.mxu1 %v223_v10 }
  0x15   :  { %85 = vmatprep.subr.mxu0 %v1939_v0  ;;  %1734 = vmatprep.subr.mxu1 %v222_v11 }
  0x16   :  { %86 = vmatpush1.msra.mxu0 %v29_v12  ;;  %v221_v12 = vld [vmem:[%s2449_s2 + $0x8] sm:$0xff]  ;;  %1735 = vmatpush3.msra.mxu1 %v222_v11 }
  0x17   :  { %87 = vmatprep.subr.mxu0 %v1939_v0  ;;  %1736 = vmatprep.subr.mxu1 %v221_v12 }
  0x18   :  { %88 = vmatpush1.msra.mxu0 %v28_v13  ;;  %1737 = vmatpush3.msra.mxu1 %v221_v12  ;;  %v220_v13 = vld [vmem:[%s2449_s2] sm:$0xff] }
  0x19   :  { %89 = vmatprep.subr.mxu0 %v1939_v0  ;;  %1738 = vmatprep.subr.mxu1 %v220_v13 }
  0x1a   :  { %90 = vmatpush1.msra.mxu0 %v27_v14  ;;  %1739 = vmatpush3.msra.mxu1 %v220_v13 }
  0x1b   :  { %91 = vmatprep.subr.mxu0 %v1939_v0 }
  0x1c   :  { %92 = vmatpush1.msra.mxu0 %v26_v15 }
  0x1d   :  { %93 = vmatprep.subr.mxu0 %v1939_v0 }
  0x1e   :  { %94 = vmatpush1.msra.mxu0 %v25_v16 }
  0x1f   :  { %95 = vmatprep.subr.mxu0 %v1939_v0 }
  0x20   :  { %96 = vmatpush1.msra.mxu0 %v24_v17 }
  0x21   :  { %113 = vmatprep.subr.mxu0 %v1939_v0 }
  0x22   :  { %114 = vmatpush2.msra.mxu0 %v47_v18 }
  0x23   :  { %115 = vmatprep.subr.mxu0 %v1939_v0 }
  0x24   :  { %116 = vmatpush2.msra.mxu0 %v46_v19  ;;  %v204_v19 = vlaneseq }
  0x25   :  { %117 = vmatprep.subr.mxu0 %v1939_v0 }
  0x26   :  { %118 = vmatpush2.msra.mxu0 %v45_v20 }
  0x27   :  { %119 = vmatprep.subr.mxu0 %v1939_v0 }
  0x28   :  { %120 = vmatpush2.msra.mxu0 %v44_v21 }
  0x29   :  { %121 = vmatprep.subr.mxu0 %v1939_v0 }
  0x2a   :  { %122 = vmatpush2.msra.mxu0 %v43_v22 }
  0x2b   :  { %123 = vmatprep.subr.mxu0 %v1939_v0 }
  0x2c   :  { %124 = vmatpush2.msra.mxu0 %v42_v23  ;;  %v2140_v23 = vshrl.u32 %v204_v19, 7 }
  0x2d   :  { %125 = vmatprep.subr.mxu0 %v1939_v0 }
  0x2e   :  { %126 = vmatpush2.msra.mxu0 %v41_v24 }
  0x2f   :  { %127 = vmatprep.subr.mxu0 %v1939_v0 }
  0x30   :  { %128 = vmatpush2.msra.mxu0 %v40_v25 }
  0x31   :  { %130 = vmatmul.mubr.f32.vlgmr.msra.gmra.mxu0 %v16_v26 }
  0x32   :  { %1612 = vmatprep.mubr.msk.f32.mxu0 %vm52_vm0, %v19_v27  ;;  %v2143_v27 = vsub.s32 0, %v2140_v23 }
  0x35   :  { %135 = vmatmul.mubr.f32.gmra.mxu0 %v18_v28  ;;  %v2148_v28 = vld [vmem:[%s2449_s2 + $0x110] sm:$0xff] }
  0x36   :  { %1613 = vmatprep.mubr.msk.f32.mxu0 %vm52_vm0, %v21_v29 }
  0x39   :  { %140 = vmatmul.mubr.f32.gmra.mxu0 %v20_v30  ;;  %v214_v30 = vsub.s32 1, %v2140_v23 }
  0x3a   :  { %1614 = vmatprep.mubr.msk.f32.mxu0 %vm52_vm0, %v23_v31  ;;  %v207_v31 = vrot.slane %v2148_v28, %v2143_v27 }
  0x3d   :  { %145 = vmatmul.mubr.f32.gmra.mxu0 %v22_v32 }
  0xf1   :  { %v131_v34 = vpop.f32.mrf.mxu0 }
  0xf2   :  { %v2095_v35 = vadd.f32 %v131_v34, %v48_v33  ;;  %v215_v34 = vrot.slane %v2148_v28, %v214_v30 }
  0xf3   :  { %v133_v36 = vpop.f32.mrf.mxu0 }
  0xf4   :  { %v151_v38 = vsel %vm150_vm1, %v2095_v35, 0.0 }
  0xf5   :  { %v136_v39 = vpop.f32.mrf.mxu0  ;;  %152 = vadd.xlane.f32.xlu0 %v151_v38 }
  0xf6   :  { %v2102_v40 = vadd.f32 %v136_v39, %v49_v37 }
  0xf7   :  { %v138_v41 = vpop.f32.mrf.mxu0 }
  0xf8   :  { %v154_v43 = vsel %vm150_vm1, %v2102_v40, 0.0 }
  0xf9   :  { %v141_v44 = vpop.f32.mrf.mxu0  ;;  %155 = vadd.xlane.f32.xlu0 %v154_v43 }
  0xfa   :  { %v2109_v45 = vadd.f32 %v141_v44, %v50_v42 }
  0xfb   :  { %v143_v46 = vpop.f32.mrf.mxu0 }
  0xfc   :  { %v157_v48 = vsel %vm150_vm1, %v2109_v45, 0.0 }
  0xfd   :  { %v146_v49 = vpop.f32.mrf.mxu0  ;;  %158 = vadd.xlane.f32.xlu1 %v157_v48 }
  0xfe   :  { %v2116_v50 = vadd.f32 %v146_v49, %v51_v47 }
  0xff   :  { %v148_v51 = vpop.f32.mrf.mxu0 }
 0x100   :  { %v160_v52 = vsel %vm150_vm1, %v2116_v50, 0.0 }
 0x101   :  { %161 = vadd.xlane.f32.xlu1 %v160_v52 }
 0x17e   :  { %v153_v53 = vpop.xlane.xlu0 %152 }
 0x17f   :  { %v164_v54 = vmul.f32 0.03125, %v153_v53 }
 0x181   :  { %v168_v55 = vsub.f32 %v2095_v35, %v164_v54  ;;  %v1615_v54 = vld [vmem:[%s2449_s2 + $0x100] ss:$0 sm:$0xff] }
 0x182   :  { %v156_v56 = vpop.xlane.xlu0 %155 }
 0x183   :  { %v165_v57 = vmul.f32 0.03125, %v156_v56  ;;  %v172_v58 = vmul.f32 %v168_v55, %v168_v55 }
 0x185   :  { %v169_v59 = vsub.f32 %v2102_v40, %v165_v57  ;;  %v176_v60 = vsel %vm150_vm1, %v172_v58, 0.0 }
 0x186   :  { %v159_v61 = vpop.xlane.xlu1 %158  ;;  %177 = vadd.xlane.f32.xlu0 %v176_v60 }
 0x187   :  { %v166_v62 = vmul.f32 0.03125, %v159_v61  ;;  %v173_v63 = vmul.f32 %v169_v59, %v169_v59 }
 0x189   :  { %v170_v1 = vsub.f32 %v2109_v45, %v166_v62  ;;  %v179_v2 = vsel %vm150_vm1, %v173_v63, 0.0 }
 0x18a   :  { %v162_v3 = vpop.xlane.xlu1 %161  ;;  %180 = vadd.xlane.f32.xlu1 %v179_v2 }
 0x18b   :  { %v167_v4 = vmul.f32 0.03125, %v162_v3  ;;  %v174_v5 = vmul.f32 %v170_v1, %v170_v1  ;;  %v2192_v3 = vld [vmem:[%s2449_s2 + $0xe8] sm:$0xff] }
 0x18d   :  { %v171_v6 = vsub.f32 %v2116_v50, %v167_v4  ;;  %v182_v7 = vsel %vm150_vm1, %v174_v5, 0.0  ;;  %v2197_v5 = vld [vmem:[%s2449_s2 + $0xe0] sm:$0xff] }
 0x18e   :  { %183 = vadd.xlane.f32.xlu0 %v182_v7 }
 0x18f   :  { %v175_v8 = vmul.f32 %v171_v6, %v171_v6 }
 0x191   :  { %v185_v9 = vsel %vm150_vm1, %v175_v8, 0.0  ;;  %v2203_v8 = vld [vmem:[%s2449_s2 + $0xf8] sm:$0xff] }
 0x192   :  { %186 = vadd.xlane.f32.xlu1 %v185_v9 }
 0x20f   :  { %v178_v14 = vpop.xlane.xlu0 %177 }
 0x210   :  { %v188_v15 = vmul.f32 0.03125, %v178_v14 }
 0x212   :  { %v192_v16 = vadd.f32 1e-06, %v188_v15  ;;  %v2212_v15 = vld [vmem:[%s2449_s2 + $0xf0] sm:$0xff] }
 0x213   :  { %v181_v17 = vpop.xlane.xlu1 %180 }
 0x214   :  { %1872 = vrsqrt.f32 %v192_v16  ;;  %v189_v18 = vmul.f32 0.03125, %v181_v17 }
 0x216   :  { %v193_v20 = vadd.f32 1e-06, %v189_v18 }
 0x217   :  { %v184_v21 = vpop.xlane.xlu0 %183 }
 0x218   :  { %1874 = vrsqrt.f32 %v193_v20  ;;  %v190_v22 = vmul.f32 0.03125, %v184_v21 }
 0x21a   :  { %v194_v24 = vadd.f32 1e-06, %v190_v22 }
 0x21b   :  { %v187_v25 = vpop.xlane.xlu1 %186 }
 0x21c   :  { %1876 = vrsqrt.f32 %v194_v24  ;;  %v191_v26 = vmul.f32 0.03125, %v187_v25 }
 0x21e   :  { %v195_v29 = vadd.f32 1e-06, %v191_v26 }
 0x220   :  { %1878 = vrsqrt.f32 %v195_v29 }
 0x221   :  { %v1873_v32 = vpop.eup %1872 }
 0x222   :  { %v200_v33 = vmul.f32 %v1873_v32, %v168_v55 }
 0x224   :  { %v208_v36 = vmul.f32 %v207_v31, %v200_v33 }
 0x225   :  { %v1875_v37 = vpop.eup %1874 }
 0x226   :  { %v216_v38 = vadd.f32 %v215_v34, %v208_v36  ;;  %v201_v39 = vmul.f32 %v1875_v37, %v169_v59 }
 0x228   :  { %1740 = vmatprep.mubr.msk.f32.mxu1 %vm150_vm1, %v216_v38  ;;  %v209_v41 = vmul.f32 %v207_v31, %v201_v39 }
 0x229   :  { %v1877_v42 = vpop.eup %1876 }
 0x22a   :  { %v217_v43 = vadd.f32 %v215_v34, %v209_v41  ;;  %v202_v44 = vmul.f32 %v1877_v42, %v170_v1 }
 0x22c   :  { %1741 = vmatmul.mubr.msk.f32.vlgmr.msra.gmra.mxu1 %vm150_vm1, %v217_v43  ;;  %v210_v46 = vmul.f32 %v207_v31, %v202_v44 }
 0x22d   :  { %v1879_v47 = vpop.eup %1878 }
 0x22e   :  { %v218_v48 = vadd.f32 %v215_v34, %v210_v46  ;;  %v203_v49 = vmul.f32 %v1879_v47, %v171_v6 }
 0x230   :  { %1743 = vmatprep.mubr.msk.f32.mxu1 %vm150_vm1, %v218_v48  ;;  %v211_v51 = vmul.f32 %v207_v31, %v203_v49 }
 0x232   :  { %v219_v52 = vadd.f32 %v215_v34, %v211_v51 }
 0x234   :  { %1744 = vmatmul.mubr.msk.f32.gmra.mxu1 %vm150_vm1, %v219_v52 }
 0x2ec   :  { %v1742_v53 = vpop.f32.mrf.mxu1 }
 0x2ed   :  { %v2171_v61 = vadd.f32 %v1742_v53, %v1615_v54 }
 0x2ee   :  { %v307_v55 = vpop.f32.mrf.mxu1 }
 0x2ef   :  { %v2161_v56 = vadd.f32 %v1615_v54, %v307_v55 }
 0x2f1   :  { %1754 = vmatprep.mubr.msk.f32.mxu1 %vm342_vm2, %v2161_v56 }
 0x2f4   :  { %v1745_v57 = vpop.f32.mrf.mxu1 }
 0x2f5   :  { %v2165_v58 = vadd.f32 %v1745_v57, %v1615_v54 }
 0x2f6   :  { %v317_v59 = vpop.f32.mrf.mxu1 }
 0x2f7   :  { %v2167_v60 = vadd.f32 %v1615_v54, %v317_v59  ;;  %340 = vrot.lane.b32.xlu0 %v2165_v58, %s1940_s13 }
 0x2f9   :  { %338 = vrot.lane.b32.xlu1 %v2167_v60, %s1940_s13 }
 0x2fd   :  { %336 = vrot.lane.b32.xlu1 %v2171_v61, %s1940_s13 }
 0x301   :  { %334 = vrot.lane.b32.xlu1 %v2161_v56, %s1940_s13 }
 0x369   :  { %v341_v62 = vpop.permute.xlu0 %340 }
 0x36a   :  { %1746 = vmatprep.subr.msk.mxu1 %vm342_vm2, %v341_v62 }
 0x36b   :  { %1747 = vmatpush3.xpose.msk.msra.mxu1 %vm342_vm2, %v341_v62  ;;  %v339_v63 = vpop.permute.xlu1 %338 }
 0x36c   :  { %1748 = vmatprep.subr.msk.mxu1 %vm342_vm2, %v339_v63 }
 0x36f   :  { %1749 = vmatpush3.xpose.msk.msra.mxu1 %vm342_vm2, %v339_v63  ;;  %v337_v1 = vpop.permute.xlu1 %336 }
 0x370   :  { %1750 = vmatprep.subr.msk.mxu1 %vm342_vm2, %v337_v1 }
 0x373   :  { %1751 = vmatpush3.xpose.msk.msra.mxu1 %vm342_vm2, %v337_v1  ;;  %v335_v2 = vpop.permute.xlu1 %334 }
 0x374   :  { %1752 = vmatprep.subr.msk.mxu1 %vm342_vm2, %v335_v2 }
 0x377   :  { %1753 = vmatpush3.xpose.msk.msra.mxu1 %vm342_vm2, %v335_v2 }
 0x37a   :  { %1755 = vmatmul.mubr.msk.f32.vlgmr.msra.gmra.mxu1 %vm342_vm2, %v2171_v61 }
 0x37b   :  { %1757 = vmatprep.mubr.msk.f32.mxu1 %vm342_vm2, %v2167_v60 }
 0x37e   :  { %1758 = vmatmul.mubr.msk.f32.gmra.mxu1 %vm342_vm2, %v2165_v58 }
 0x43a   :  { %v1756_v4 = vpop.f32.mrf.mxu1 }
 0x43b   :  { %v431_v6 = vadd.f32 %v1756_v4, %v2192_v3 }
 0x43c   :  { %v425_v7 = vpop.f32.mrf.mxu1 }
 0x43d   :  { %v426_v9 = vadd.f32 %v425_v7, %v2197_v5  ;;  %v447_v10 = vsel %vm150_vm1, %v431_v6, -inf }
 0x43e   :  { %448 = vmax.xlane.f32.xlu1 %v447_v10  ;;  %v1759_v11 = vpop.f32.mrf.mxu1 }
 0x43f   :  { %v441_v12 = vadd.f32 %v1759_v11, %v2203_v8  ;;  %v444_v13 = vsel %vm150_vm1, %v426_v9, -inf }
 0x440   :  { %v435_v14 = vpop.f32.mrf.mxu1  ;;  %445 = vmax.xlane.f32.xlu0 %v444_v13 }
 0x441   :  { %v436_v16 = vadd.f32 %v435_v14, %v2212_v15  ;;  %v453_v17 = vsel %vm150_vm1, %v441_v12, -inf }
 0x443   :  { %v450_v18 = vsel %vm150_vm1, %v436_v16, -inf }
 0x444   :  { %454 = vmax.xlane.f32.xlu0 %v453_v17 }
 0x448   :  { %451 = vmax.xlane.f32.xlu0 %v450_v18 }
 0x44f   :  { %492 = vrot.lane.b32.xlu1 %v2167_v60, %s1941_s21 }
 0x453   :  { %490 = vrot.lane.b32.xlu1 %v2171_v61, %s1941_s21 }
 0x457   :  { %488 = vrot.lane.b32.xlu1 %v2161_v56, %s1941_s21 }
 0x45e   :  { %494 = vrot.lane.b32.xlu0 %v2165_v58, %s1941_s21 }
 0x4c7   :  { %v449_v19 = vpop.xlane.xlu1 %448 }
 0x4c8   :  { %v457_v20 = vsub.f32 %v431_v6, %v449_v19 }
 0x4c9   :  { %v446_v21 = vpop.xlane.xlu0 %445 }
 0x4ca   :  { %v462_v22 = vmul.f32 1.442695, %v457_v20  ;;  %v456_v24 = vsub.f32 %v426_v9, %v446_v21 }
 0x4cb   :  { %v493_v29 = vpop.permute.xlu1 %492 }
 0x4cc   :  { %1880 = vpow2.f32 %v462_v22  ;;  %v460_v25 = vmul.f32 1.442695, %v456_v24 }
 0x4cd   :  { %v455_v26 = vpop.xlane.xlu0 %454 }
 0x4ce   :  { %1882 = vpow2.f32 %v460_v25  ;;  %v459_v39 = vsub.f32 %v441_v12, %v455_v26 }
 0x4cf   :  { %v491_v31 = vpop.permute.xlu1 %490 }
 0x4d0   :  { %v466_v42 = vmul.f32 1.442695, %v459_v39 }
 0x4d1   :  { %v452_v30 = vpop.xlane.xlu0 %451 }
 0x4d2   :  { %v458_v41 = vsub.f32 %v436_v16, %v452_v30  ;;  %1884 = vpow2.f32 %v466_v42 }
 0x4d3   :  { %v489_v37 = vpop.permute.xlu1 %488 }
 0x4d4   :  { %v464_v43 = vmul.f32 1.442695, %v458_v41 }
 0x4d5   :  { %v495_v32 = vpop.permute.xlu0 %494 }
 0x4d6   :  { %1760 = vmatprep.subr.mxu1 %v495_v32  ;;  %1886 = vpow2.f32 %v464_v43 }
 0x4d7   :  { %1761 = vmatpush3.msra.mxu1 %v495_v32 }
 0x4d8   :  { %1762 = vmatprep.subr.mxu1 %v493_v29 }
 0x4d9   :  { %v1881_v33 = vpop.eup %1880  ;;  %1763 = vmatpush3.msra.mxu1 %v493_v29 }
 0x4da   :  { %1764 = vmatprep.subr.mxu1 %v491_v31  ;;  %v471_v34 = vsel %vm150_vm1, %v1881_v33, 0.0 }
 0x4db   :  { %v1883_v36 = vpop.eup %1882  ;;  %472 = vadd.xlane.f32.xlu1 %v471_v34  ;;  %1765 = vmatpush3.msra.mxu1 %v491_v31 }
 0x4dc   :  { %1766 = vmatprep.subr.mxu1 %v489_v37  ;;  %v468_v38 = vsel %vm150_vm1, %v1883_v36, 0.0 }
 0x4dd   :  { %469 = vadd.xlane.f32.xlu0 %v468_v38  ;;  %1767 = vmatpush3.msra.mxu1 %v489_v37 }
 0x4df   :  { %v1885_v44 = vpop.eup %1884 }
 0x4e0   :  { %v477_v47 = vsel %vm150_vm1, %v1885_v44, 0.0 }
 0x4e3   :  { %v1887_v46 = vpop.eup %1886 }
 0x4e4   :  { %v474_v48 = vsel %vm150_vm1, %v1887_v46, 0.0 }
 0x4ec   :  { %609 = vrot.lane.b32.xlu1 %v2167_v60, %s1942_s22 }
 0x4f3   :  { %611 = vrot.lane.b32.xlu0 %v2165_v58, %s1942_s22 }
 0x510   :  { %478 = vadd.xlane.f32.xlu1 %v477_v47 }
 0x512   :  { %475 = vadd.xlane.f32.xlu0 %v474_v48 }
 0x521   :  { %605 = vrot.lane.b32.xlu1 %v2161_v56, %s1942_s22 }
 0x525   :  { %599 = vrot.lane.b32.xlu1 %v2171_v61, %s1943_s23 }
 0x528   :  { %607 = vrot.lane.b32.xlu0 %v2171_v61, %s1942_s22 }
 0x529   :  { %603 = vrot.lane.b32.xlu1 %v2165_v58, %s1943_s23 }
 0x52c   :  { %597 = vrot.lane.b32.xlu0 %v2161_v56, %s1943_s23 }
 0x530   :  { %601 = vrot.lane.b32.xlu0 %v2167_v60, %s1943_s23 }
 0x564   :  { %v473_v49 = vpop.xlane.xlu1 %472 }
 0x565   :  { %1888 = vrcp.f32 %v473_v49 }
 0x566   :  { %v470_v51 = vpop.xlane.xlu0 %469 }
 0x567   :  { %1890 = vrcp.f32 %v470_v51 }
 0x568   :  { %v610_v59 = vpop.permute.xlu1 %609 }
 0x56a   :  { %v612_v52 = vpop.permute.xlu0 %611 }
 0x56b   :  { %1774 = vmatprep.subr.msk.mxu1 %vm342_vm2, %v612_v52 }
 0x572   :  { %v1889_v53 = vpop.eup %1888 }
 0x573   :  { %v485_v57 = vmul.f32 %v1889_v53, %v1881_v33 }
 0x574   :  { %v1891_v54 = vpop.eup %1890 }
 0x575   :  { %v484_v55 = vmul.f32 %v1891_v54, %v1883_v36 }
 0x577   :  { %1768 = vmatprep.mubr.msk.f32.mxu1 %vm150_vm1, %v484_v55 }
 0x578   :  { %1769 = vmatmul.mubr.msk.f32.vlgmr.msra.gmra.mxu1 %vm150_vm1, %v485_v57 }
 0x579   :  { %1775 = vmatpush3.xpose.msk.msra.mxu1 %vm342_vm2, %v612_v52 }
 0x57a   :  { %1776 = vmatprep.subr.msk.mxu1 %vm342_vm2, %v610_v59 }
 0x57d   :  { %1777 = vmatpush3.xpose.msk.msra.mxu1 %vm342_vm2, %v610_v59 }
 0x599   :  { %v479_v62 = vpop.xlane.xlu1 %478 }
 0x59a   :  { %1892 = vrcp.f32 %v479_v62 }
 0x59b   :  { %v476_v63 = vpop.xlane.xlu0 %475 }
 0x59c   :  { %1894 = vrcp.f32 %v476_v63 }
 0x59d   :  { %v606_v2 = vpop.permute.xlu1 %605 }
 0x59f   :  { %v608_v1 = vpop.permute.xlu0 %607 }
 0x5a0   :  { %1778 = vmatprep.subr.msk.mxu1 %vm342_vm2, %v608_v1 }
 0x5a1   :  { %1779 = vmatpush3.xpose.msk.msra.mxu1 %vm342_vm2, %v608_v1  ;;  %v600_v11 = vpop.permute.xlu1 %599 }
 0x5a2   :  { %1780 = vmatprep.subr.msk.mxu1 %vm342_vm2, %v606_v2 }
 0x5a3   :  { %v598_v9 = vpop.permute.xlu0 %597 }
 0x5a5   :  { %1781 = vmatpush3.xpose.msk.msra.mxu1 %vm342_vm2, %v606_v2  ;;  %v604_v13 = vpop.permute.xlu1 %603 }
 0x5a7   :  { %v1893_v4 = vpop.eup %1892  ;;  %v602_v12 = vpop.permute.xlu0 %601 }
 0x5a8   :  { %v487_v10 = vmul.f32 %v1893_v4, %v1885_v44 }
 0x5a9   :  { %v1895_v6 = vpop.eup %1894 }
 0x5aa   :  { %v486_v7 = vmul.f32 %v1895_v6, %v1887_v46 }
 0x5ac   :  { %1771 = vmatprep.mubr.msk.f32.mxu1 %vm150_vm1, %v486_v7 }
 0x5ad   :  { %1772 = vmatmul.mubr.msk.f32.gmra.mxu1 %vm150_vm1, %v487_v10  ;;  %v890_v10 = vld [vmem:[%s2449_s2 + $0x38] sm:$0xff] }
 0x5ae   :  { %1782 = vmatprep.mubr.msk.f32.mxu1 %vm342_vm2, %v598_v9 }
 0x5b1   :  { %1783 = vmatmul.mubr.msk.f32.vlgmr.msra.gmra.mxu1 %vm342_vm2, %v600_v11  ;;  %v889_v11 = vld [vmem:[%s2449_s2 + $0x30] sm:$0xff] }
 0x5b2   :  { %1785 = vmatprep.mubr.msk.f32.mxu1 %vm342_vm2, %v602_v12  ;;  %v888_v12 = vld [vmem:[%s2449_s2 + $0x28] sm:$0xff] }
 0x5b5   :  { %1786 = vmatmul.mubr.msk.f32.gmra.mxu1 %vm342_vm2, %v604_v13  ;;  %v887_v13 = vld [vmem:[%s2449_s2 + $0x20] sm:$0xff] }
 0x638   :  { %v2249_v14 = vpop.f32.mrf.mxu1 }
 0x63a   :  { %v2251_v16 = vpop.f32.mrf.mxu1 }
 0x66d   :  { %v2253_v17 = vpop.f32.mrf.mxu1 }
 0x66f   :  { %v2255_v18 = vpop.f32.mrf.mxu1 }
 0x671   :  { %v1784_v19 = vpop.f32.mrf.mxu1 }
 0x672   :  { %v701_v20 = vadd.f32 %v1784_v19, %v2192_v3 }
 0x673   :  { %v695_v21 = vpop.f32.mrf.mxu1 }
 0x674   :  { %v696_v22 = vadd.f32 %v695_v21, %v2197_v5  ;;  %v717_v24 = vsel %vm150_vm1, %v701_v20, -inf }
 0x675   :  { %718 = vmax.xlane.f32.xlu1 %v717_v24  ;;  %v1787_v25 = vpop.f32.mrf.mxu1 }
 0x676   :  { %v714_v26 = vsel %vm150_vm1, %v696_v22, -inf  ;;  %v711_v31 = vadd.f32 %v1787_v25, %v2203_v8 }
 0x677   :  { %715 = vmax.xlane.f32.xlu0 %v714_v26  ;;  %v705_v29 = vpop.f32.mrf.mxu1 }
 0x678   :  { %v706_v30 = vadd.f32 %v705_v29, %v2212_v15  ;;  %v723_v3 = vsel %vm150_vm1, %v711_v31, -inf }
 0x67a   :  { %v720_v32 = vsel %vm150_vm1, %v706_v30, -inf }
 0x67b   :  { %721 = vmax.xlane.f32.xlu0 %v720_v32 }
 0x67f   :  { %724 = vmax.xlane.f32.xlu0 %v723_v3 }
 0x6fe   :  { %v719_v33 = vpop.xlane.xlu1 %718 }
 0x6ff   :  { %v727_v5 = vsub.f32 %v701_v20, %v719_v33 }
 0x700   :  { %v716_v34 = vpop.xlane.xlu0 %715 }
 0x701   :  { %v732_v36 = vmul.f32 1.442695, %v727_v5  ;;  %v726_v37 = vsub.f32 %v696_v22, %v716_v34 }
 0x703   :  { %1896 = vpow2.f32 %v732_v36  ;;  %v730_v38 = vmul.f32 1.442695, %v726_v37 }
 0x704   :  { %v722_v39 = vpop.xlane.xlu0 %721 }
 0x705   :  { %1898 = vpow2.f32 %v730_v38  ;;  %v728_v41 = vsub.f32 %v706_v30, %v722_v39 }
 0x707   :  { %v734_v42 = vmul.f32 1.442695, %v728_v41 }
 0x708   :  { %v725_v15 = vpop.xlane.xlu0 %724 }
 0x709   :  { %1900 = vpow2.f32 %v734_v42  ;;  %v729_v8 = vsub.f32 %v711_v31, %v725_v15 }
 0x70b   :  { %v736_v43 = vmul.f32 1.442695, %v729_v8 }
 0x70d   :  { %1902 = vpow2.f32 %v736_v43 }
 0x710   :  { %v1897_v44 = vpop.eup %1896 }
 0x711   :  { %v741_v46 = vsel %vm150_vm1, %v1897_v44, 0.0 }
 0x712   :  { %v1899_v47 = vpop.eup %1898  ;;  %742 = vadd.xlane.f32.xlu1 %v741_v46 }
 0x713   :  { %v738_v48 = vsel %vm150_vm1, %v1899_v47, 0.0 }
 0x714   :  { %739 = vadd.xlane.f32.xlu0 %v738_v48 }
 0x716   :  { %v1901_v49 = vpop.eup %1900 }
 0x717   :  { %v744_v51 = vsel %vm150_vm1, %v1901_v49, 0.0 }
 0x718   :  { %745 = vadd.xlane.f32.xlu0 %v744_v51 }
 0x71a   :  { %v1903_v52 = vpop.eup %1902 }
 0x71b   :  { %v747_v53 = vsel %vm150_vm1, %v1903_v52, 0.0 }
 0x71c   :  { %748 = vadd.xlane.f32.xlu1 %v747_v53 }
 0x72d   :  { %762 = vrot.lane.b32.xlu1 %v2167_v60, %s1944_s24 }
 0x72e   :  { %764 = vrot.lane.b32.xlu0 %v2165_v58, %s1944_s24 }
 0x731   :  { %760 = vrot.lane.b32.xlu1 %v2171_v61, %s1944_s24 }
 0x735   :  { %758 = vrot.lane.b32.xlu1 %v2161_v56, %s1944_s24 }
 0x79b   :  { %v743_v55 = vpop.xlane.xlu1 %742 }
 0x79d   :  { %v740_v54 = vpop.xlane.xlu0 %739 }
 0x79e   :  { %1904 = vrcp.f32 %v740_v54 }
 0x79f   :  { %1906 = vrcp.f32 %v743_v55 }
 0x7a1   :  { %v746_v57 = vpop.xlane.xlu0 %745 }
 0x7a2   :  { %1908 = vrcp.f32 %v746_v57 }
 0x7a5   :  { %v749_v59 = vpop.xlane.xlu1 %748  ;;  %v765_v62 = vpop.permute.xlu0 %764 }
 0x7a6   :  { %1910 = vrcp.f32 %v749_v59  ;;  %1788 = vmatprep.subr.mxu1 %v765_v62 }
 0x7a7   :  { %1789 = vmatpush3.msra.mxu1 %v765_v62 }
 0x7a9   :  { %v763_v63 = vpop.permute.xlu1 %762 }
 0x7aa   :  { %1790 = vmatprep.subr.mxu1 %v763_v63 }
 0x7ab   :  { %v1905_v60 = vpop.eup %1904  ;;  %1791 = vmatpush3.msra.mxu1 %v763_v63 }
 0x7ac   :  { %v754_v58 = vmul.f32 %v1905_v60, %v1899_v47  ;;  %v1907_v56 = vpop.eup %1906 }
 0x7ad   :  { %v761_v1 = vpop.permute.xlu1 %760  ;;  %v755_v4 = vmul.f32 %v1907_v56, %v1897_v44 }
 0x7ae   :  { %1792 = vmatprep.subr.mxu1 %v761_v1  ;;  %1796 = vmatprep.mubr.msk.f32.mxu1 %vm150_vm1, %v754_v58 }
 0x7af   :  { %1793 = vmatpush3.msra.mxu1 %v761_v1  ;;  %v1909_v61 = vpop.eup %1908 }
 0x7b0   :  { %v756_v7 = vmul.f32 %v1909_v61, %v1901_v49  ;;  %v1071_v61 = vld [vmem:[%s2449_s2 + $0x58] sm:$0xff] }
 0x7b1   :  { %v759_v2 = vpop.permute.xlu1 %758 }
 0x7b2   :  { %1794 = vmatprep.subr.mxu1 %v759_v2 }
 0x7b3   :  { %v1911_v6 = vpop.eup %1910  ;;  %1795 = vmatpush3.msra.mxu1 %v759_v2  ;;  %v1070_v2 = vld [vmem:[%s2449_s2 + $0x50] sm:$0xff] }
 0x7b4   :  { %1797 = vmatmul.mubr.msk.f32.vlgmr.msra.gmra.mxu1 %vm150_vm1, %v755_v4  ;;  %v757_v9 = vmul.f32 %v1911_v6, %v1903_v52  ;;  %1802 = vmatprep.subr.mxu1 %v890_v10  ;;  %v1069_v4 = vld [vmem:[%s2449_s2 + $0x48] sm:$0xff]  ;;  %v1068_v6 = vld [vmem:[%s2449_s2 + $0x40] sm:$0xff] }
 0x7b5   :  { %1799 = vmatprep.mubr.msk.f32.mxu1 %vm150_vm1, %v756_v7  ;;  %1803 = vmatpush3.msra.mxu1 %v890_v10 }
 0x7b6   :  { %1804 = vmatprep.subr.mxu1 %v889_v11 }
 0x7b7   :  { %1805 = vmatpush3.msra.mxu1 %v889_v11 }
 0x7b8   :  { %1800 = vmatmul.mubr.msk.f32.gmra.mxu1 %vm150_vm1, %v757_v9  ;;  %1806 = vmatprep.subr.mxu1 %v888_v12 }
 0x7b9   :  { %1807 = vmatpush3.msra.mxu1 %v888_v12 }
 0x7ba   :  { %1808 = vmatprep.subr.mxu1 %v887_v13 }
 0x7bb   :  { %1809 = vmatpush3.msra.mxu1 %v887_v13 }
 0x7bc   :  { %1816 = vmatprep.subr.mxu1 %v1071_v61 }
 0x874   :  { %v1798_v19 = vpop.f32.mrf.mxu1 }
 0x875   :  { %873 = vrot.lane.b32.xlu1 %v1798_v19, %s1945_s5 }
 0x876   :  { %v848_v20 = vpop.f32.mrf.mxu1 }
 0x877   :  { %871 = vrot.lane.b32.xlu0 %v848_v20, %s1945_s5 }
 0x878   :  { %v1801_v21 = vpop.f32.mrf.mxu1 }
 0x879   :  { %877 = vrot.lane.b32.xlu1 %v1801_v21, %s1945_s5 }
 0x87a   :  { %v858_v22 = vpop.f32.mrf.mxu1 }
 0x87b   :  { %875 = vrot.lane.b32.xlu0 %v858_v22, %s1945_s5 }
 0x8e7   :  { %v874_v24 = vpop.permute.xlu1 %873 }
 0x8e8   :  { %v884_v29 = vsel %vm342_vm2, %v2249_v14, %v874_v24 }
 0x8e9   :  { %v872_v25 = vpop.permute.xlu0 %871 }
 0x8ea   :  { %v883_v26 = vsel %vm342_vm2, %v2251_v16, %v872_v25  ;;  %v994_v16 = vsub.s32 6, %v2140_v23 }
 0x8eb   :  { %1810 = vmatprep.mubr.msk.f32.mxu1 %vm150_vm1, %v883_v26  ;;  %v878_v30 = vpop.permute.xlu1 %877  ;;  %v1054_v26 = vsub.s32 2, %v2140_v23 }
 0x8ec   :  { %1811 = vmatmul.mubr.msk.f32.vlgmr.msra.gmra.mxu1 %vm150_vm1, %v884_v29  ;;  %v886_v3 = vsel %vm342_vm2, %v2253_v17, %v878_v30  ;;  %v995_v14 = vrot.slane %v2148_v28, %v994_v16 }
 0x8ed   :  { %v876_v31 = vpop.permute.xlu0 %875  ;;  %1817 = vmatpush3.msra.mxu1 %v1071_v61  ;;  %v1055_v30 = vrot.slane %v2148_v28, %v1054_v26 }
 0x8ee   :  { %v885_v32 = vsel %vm342_vm2, %v2255_v18, %v876_v31  ;;  %1818 = vmatprep.subr.mxu1 %v1070_v2  ;;  %v1062_v31 = vsub.s32 3, %v2140_v23 }
 0x8ef   :  { %1813 = vmatprep.mubr.msk.f32.mxu1 %vm150_vm1, %v885_v32  ;;  %1819 = vmatpush3.msra.mxu1 %v1070_v2 }
 0x8f0   :  { %1814 = vmatmul.mubr.msk.f32.gmra.mxu1 %vm150_vm1, %v886_v3  ;;  %1820 = vmatprep.subr.mxu1 %v1069_v4 }
 0x8f1   :  { %1821 = vmatpush3.msra.mxu1 %v1069_v4 }
 0x8f2   :  { %1822 = vmatprep.subr.mxu1 %v1068_v6 }
 0x8f3   :  { %1823 = vmatpush3.msra.mxu1 %v1068_v6 }
 0x9ac   :  { %v1812_v33 = vpop.f32.mrf.mxu1 }
 0x9ad   :  { %v989_v5 = vadd.f32 %v1812_v33, %v2102_v40  ;;  %v1063_v33 = vrot.slane %v2148_v28, %v1062_v31 }
 0x9ae   :  { %v969_v34 = vpop.f32.mrf.mxu1 }
 0x9af   :  { %v2304_v36 = vadd.f32 %v995_v14, %v989_v5  ;;  %v988_v37 = vadd.f32 %v969_v34, %v2095_v35 }
 0x9b0   :  { %v1815_v18 = vpop.f32.mrf.mxu1 }
 0x9b1   :  { %v2307_v38 = vadd.f32 %v995_v14, %v988_v37  ;;  %v1003_v17 = vsel %vm150_vm1, %v2304_v36, 0.0  ;;  %v991_v41 = vadd.f32 %v1815_v18, %v2116_v50 }
 0x9b2   :  { %1004 = vadd.xlane.f32.xlu1 %v1003_v17  ;;  %v979_v39 = vpop.f32.mrf.mxu1 }
 0x9b3   :  { %v990_v42 = vadd.f32 %v979_v39, %v2109_v45  ;;  %v1000_v40 = vsel %vm150_vm1, %v2307_v38, 0.0  ;;  %v2317_v8 = vadd.f32 %v995_v14, %v991_v41 }
 0x9b4   :  { %1001 = vadd.xlane.f32.xlu0 %v1000_v40 }
 0x9b5   :  { %v2315_v15 = vadd.f32 %v995_v14, %v990_v42  ;;  %v1009_v43 = vsel %vm150_vm1, %v2317_v8, 0.0 }
 0x9b7   :  { %v1006_v35 = vsel %vm150_vm1, %v2315_v15, 0.0 }
 0x9b8   :  { %1007 = vadd.xlane.f32.xlu0 %v1006_v35 }
 0x9bc   :  { %1010 = vadd.xlane.f32.xlu0 %v1009_v43 }
 0xa3b   :  { %v1005_v44 = vpop.xlane.xlu1 %1004 }
 0xa3c   :  { %v1013_v50 = vmul.f32 0.03125, %v1005_v44  ;;  %v1217_v44 = vld [vmem:[%s2449_s2 + $0x98] sm:$0xff] }
 0xa3d   :  { %v1002_v46 = vpop.xlane.xlu0 %1001  ;;  %1830 = vmatprep.subr.mxu0 %v1217_v44 }
 0xa3e   :  { %v1017_v45 = vsub.f32 %v2304_v36, %v1013_v50  ;;  %v1012_v47 = vmul.f32 0.03125, %v1002_v46  ;;  %1831 = vmatpush3.msra.mxu0 %v1217_v44  ;;  %v1216_v50 = vld [vmem:[%s2449_s2 + $0x90] sm:$0xff]  ;;  %v1215_v46 = vld [vmem:[%s2449_s2 + $0x88] sm:$0xff] }
 0xa3f   :  { %1832 = vmatprep.subr.mxu0 %v1216_v50 }
 0xa40   :  { %v1016_v48 = vsub.f32 %v2307_v38, %v1012_v47  ;;  %v1021_v49 = vmul.f32 %v1017_v45, %v1017_v45  ;;  %1833 = vmatpush3.msra.mxu0 %v1216_v50  ;;  %v1213_v47 = vld [vmem:[%s2449_s2 + $0x78] sm:$0xff] }
 0xa41   :  { %v1008_v51 = vpop.xlane.xlu0 %1007  ;;  %1834 = vmatprep.subr.mxu0 %v1215_v46 }
 0xa42   :  { %v1014_v52 = vmul.f32 0.03125, %v1008_v51  ;;  %v1027_v53 = vsel %vm150_vm1, %v1021_v49, 0.0  ;;  %v1020_v54 = vmul.f32 %v1016_v48, %v1016_v48  ;;  %1835 = vmatpush3.msra.mxu0 %v1215_v46  ;;  %v1211_v49 = vld [vmem:[%s2449_s2 + $0x68] sm:$0xff]  ;;  %v1210_v51 = vld [vmem:[%s2449_s2 + $0x60] sm:$0xff] }
 0xa43   :  { %1028 = vadd.xlane.f32.xlu1 %v1027_v53 }
 0xa44   :  { %v1018_v55 = vsub.f32 %v2315_v15, %v1014_v52  ;;  %v1024_v57 = vsel %vm150_vm1, %v1020_v54, 0.0  ;;  %v1648_v52 = vld [vmem:[%s2449_s2 + $0x108] ss:$0 sm:$0xff] }
 0xa45   :  { %1025 = vadd.xlane.f32.xlu0 %v1024_v57  ;;  %v1011_v59 = vpop.xlane.xlu0 %1010 }
 0xa46   :  { %v1015_v62 = vmul.f32 0.03125, %v1011_v59  ;;  %v1022_v63 = vmul.f32 %v1018_v55, %v1018_v55 }
 0xa48   :  { %v1019_v60 = vsub.f32 %v2317_v8, %v1015_v62  ;;  %v1030_v58 = vsel %vm150_vm1, %v1022_v63, 0.0 }
 0xa49   :  { %1031 = vadd.xlane.f32.xlu0 %v1030_v58 }
 0xa4a   :  { %v1023_v1 = vmul.f32 %v1019_v60, %v1019_v60 }
 0xa4c   :  { %v1033_v56 = vsel %vm150_vm1, %v1023_v1, 0.0 }
 0xa4d   :  { %1034 = vadd.xlane.f32.xlu1 %v1033_v56 }
 0xacc   :  { %v1029_v7 = vpop.xlane.xlu1 %1028 }
 0xacd   :  { %v1037_v9 = vmul.f32 0.03125, %v1029_v7 }
 0xace   :  { %v1026_v10 = vpop.xlane.xlu0 %1025 }
 0xacf   :  { %v1041_v11 = vadd.f32 1e-06, %v1037_v9  ;;  %v1036_v12 = vmul.f32 0.03125, %v1026_v10 }
 0xad1   :  { %1912 = vrsqrt.f32 %v1041_v11  ;;  %v1040_v13 = vadd.f32 1e-06, %v1036_v12 }
 0xad2   :  { %v1032_v19 = vpop.xlane.xlu0 %1031 }
 0xad3   :  { %1914 = vrsqrt.f32 %v1040_v13  ;;  %v1038_v20 = vmul.f32 0.03125, %v1032_v19 }
 0xad5   :  { %v1042_v21 = vadd.f32 1e-06, %v1038_v20 }
 0xad6   :  { %v1035_v22 = vpop.xlane.xlu1 %1034 }
 0xad7   :  { %1916 = vrsqrt.f32 %v1042_v21  ;;  %v1039_v24 = vmul.f32 0.03125, %v1035_v22 }
 0xad9   :  { %v1043_v25 = vadd.f32 1e-06, %v1039_v24 }
 0xadb   :  { %1918 = vrsqrt.f32 %v1043_v25 }
 0xade   :  { %v1913_v29 = vpop.eup %1912 }
 0xadf   :  { %v1049_v32 = vmul.f32 %v1913_v29, %v1017_v45  ;;  %v1214_v45 = vld [vmem:[%s2449_s2 + $0x80] sm:$0xff] }
 0xae0   :  { %v1915_v3 = vpop.eup %1914  ;;  %1836 = vmatprep.subr.mxu0 %v1214_v45 }
 0xae1   :  { %v1048_v16 = vmul.f32 %v1915_v3, %v1016_v48  ;;  %v1057_v14 = vmul.f32 %v1055_v30, %v1049_v32  ;;  %1837 = vmatpush3.msra.mxu0 %v1214_v45  ;;  %v1212_v48 = vld [vmem:[%s2449_s2 + $0x70] sm:$0xff] }
 0xae2   :  { %1838 = vmatprep.subr.mxu0 %v1213_v47 }
 0xae3   :  { %v1056_v5 = vmul.f32 %v1055_v30, %v1048_v16  ;;  %v1065_v17 = vadd.f32 %v1063_v33, %v1057_v14  ;;  %1839 = vmatpush3.msra.mxu0 %v1213_v47 }
 0xae4   :  { %v1917_v34 = vpop.eup %1916  ;;  %1840 = vmatprep.subr.mxu0 %v1212_v48 }
 0xae5   :  { %v1064_v37 = vadd.f32 %v1063_v33, %v1056_v5  ;;  %v1050_v18 = vmul.f32 %v1917_v34, %v1018_v55  ;;  %1841 = vmatpush3.msra.mxu0 %v1212_v48 }
 0xae6   :  { %1842 = vmatprep.subr.mxu0 %v1211_v49 }
 0xae7   :  { %1824 = vmatprep.mubr.msk.f32.mxu1 %vm150_vm1, %v1064_v37  ;;  %v1058_v39 = vmul.f32 %v1055_v30, %v1050_v18  ;;  %1843 = vmatpush3.msra.mxu0 %v1211_v49 }
 0xae8   :  { %v1919_v41 = vpop.eup %1918  ;;  %1825 = vmatmul.mubr.msk.f32.vlgmr.msra.gmra.mxu1 %vm150_vm1, %v1065_v17  ;;  %1844 = vmatprep.subr.mxu0 %v1210_v51 }
 0xae9   :  { %v1066_v42 = vadd.f32 %v1063_v33, %v1058_v39  ;;  %v1051_v40 = vmul.f32 %v1919_v41, %v1019_v60  ;;  %1845 = vmatpush3.msra.mxu0 %v1210_v51 }
 0xaea   :  { %1852 = vmatprep.subr.mxu0 %v1939_v0 }
 0xaeb   :  { %1827 = vmatprep.mubr.msk.f32.mxu1 %vm150_vm1, %v1066_v42  ;;  %v1059_v35 = vmul.f32 %v1055_v30, %v1051_v40  ;;  %v1220_v40 = vsub.s32 7, %v2140_v23 }
 0xaed   :  { %v1067_v43 = vadd.f32 %v1063_v33, %v1059_v35  ;;  %v1221_v35 = vrot.slane %v2148_v28, %v1220_v40 }
 0xaef   :  { %1828 = vmatmul.mubr.msk.f32.gmra.mxu1 %vm150_vm1, %v1067_v43 }
 0xba8   :  { %v1826_v53 = vpop.f32.mrf.mxu1 }
 0xba9   :  { %v1161_v54 = vadd.f32 %v1826_v53, %v1648_v52 }
 0xbaa   :  { %v1155_v55 = vpop.f32.mrf.mxu1 }
 0xbab   :  { %v1179_v57 = vmul.f32 0.044715, %v1161_v54  ;;  %v1156_v59 = vadd.f32 %v1648_v52, %v1155_v55  ;;  %v1175_v16 = vmul.f32 0.5, %v1161_v54 }
 0xbad   :  { %v1183_v62 = vmul.f32 %v1179_v57, %v1161_v54  ;;  %v1178_v63 = vmul.f32 0.044715, %v1156_v59  ;;  %v1174_v32 = vmul.f32 0.5, %v1156_v59 }
 0xbaf   :  { %v1187_v60 = vmul.f32 %v1183_v62, %v1161_v54  ;;  %v1182_v58 = vmul.f32 %v1178_v63, %v1156_v59  ;;  %v1829_v1 = vpop.f32.mrf.mxu1 }
 0xbb0   :  { %v1171_v56 = vadd.f32 %v1829_v1, %v1648_v52 }
 0xbb1   :  { %v1191_v61 = vadd.f32 %v1187_v60, %v1161_v54  ;;  %v1186_v2 = vmul.f32 %v1182_v58, %v1156_v59  ;;  %v1165_v4 = vpop.f32.mrf.mxu1 }
 0xbb2   :  { %v1181_v6 = vmul.f32 0.044715, %v1171_v56  ;;  %v1166_v7 = vadd.f32 %v1648_v52, %v1165_v4  ;;  %v1177_v39 = vmul.f32 0.5, %v1171_v56 }
 0xbb3   :  { %v1195_v9 = vmul.f32 0.7978846, %v1191_v61  ;;  %v1190_v10 = vadd.f32 %v1186_v2, %v1156_v59 }
 0xbb4   :  { %v1185_v11 = vmul.f32 %v1181_v6, %v1171_v56  ;;  %v1180_v12 = vmul.f32 0.044715, %v1166_v7  ;;  %v1176_v18 = vmul.f32 0.5, %v1166_v7 }
 0xbb5   :  { %1920 = vtanh.f32 %v1195_v9  ;;  %v1194_v13 = vmul.f32 0.7978846, %v1190_v10 }
 0xbb6   :  { %v1189_v19 = vmul.f32 %v1185_v11, %v1171_v56  ;;  %v1184_v20 = vmul.f32 %v1180_v12, %v1166_v7 }
 0xbb7   :  { %1922 = vtanh.f32 %v1194_v13 }
 0xbb8   :  { %v1193_v21 = vadd.f32 %v1189_v19, %v1171_v56  ;;  %v1188_v22 = vmul.f32 %v1184_v20, %v1166_v7  ;;  %v1394_v19 = vld [vmem:[%s2449_s2 + $0xb8] sm:$0xff]  ;;  %v1393_v20 = vld [vmem:[%s2449_s2 + $0xb0] sm:$0xff] }
 0xbba   :  { %v1192_v24 = vadd.f32 %v1188_v22, %v1166_v7  ;;  %v1197_v25 = vmul.f32 0.7978846, %v1193_v21  ;;  %v1392_v21 = vld [vmem:[%s2449_s2 + $0xa8] sm:$0xff]  ;;  %v1391_v22 = vld [vmem:[%s2449_s2 + $0xa0] sm:$0xff] }
 0xbbc   :  { %v1196_v26 = vmul.f32 0.7978846, %v1192_v24  ;;  %1924 = vtanh.f32 %v1197_v25 }
 0xbbe   :  { %1926 = vtanh.f32 %v1196_v26 }
 0xbc2   :  { %v1921_v29 = vpop.eup %1920 }
 0xbc3   :  { %v1203_v31 = vadd.f32 1.0, %v1921_v29 }
 0xbc4   :  { %v1923_v30 = vpop.eup %1922 }
 0xbc5   :  { %v1202_v3 = vadd.f32 1.0, %v1923_v30  ;;  %v1207_v33 = vmul.f32 %v1203_v31, %v1175_v16 }
 0xbc7   :  { %v1206_v14 = vmul.f32 %v1202_v3, %v1174_v32 }
 0xbc9   :  { %v1925_v5 = vpop.eup %1924  ;;  %1846 = vmatprep.mubr.msk.f32.mxu0 %vm52_vm0, %v1206_v14 }
 0xbca   :  { %1847 = vmatmul.mubr.msk.f32.vlgmr.msra.gmra.mxu0 %vm52_vm0, %v1207_v33  ;;  %v1205_v37 = vadd.f32 1.0, %v1925_v5 }
 0xbcb   :  { %v1927_v34 = vpop.eup %1926  ;;  %1853 = vmatpush3.msra.mxu0 %v1394_v19 }
 0xbcc   :  { %v1204_v17 = vadd.f32 1.0, %v1927_v34  ;;  %v1209_v42 = vmul.f32 %v1205_v37, %v1177_v39  ;;  %1854 = vmatprep.subr.mxu0 %v1939_v0  ;;  %v1377_v34 = vsub.s32 4, %v2140_v23 }
 0xbcd   :  { %1855 = vmatpush3.msra.mxu0 %v1393_v20 }
 0xbce   :  { %v1208_v41 = vmul.f32 %v1204_v17, %v1176_v18  ;;  %1856 = vmatprep.subr.mxu0 %v1939_v0  ;;  %v1938_v18 = vld [vmem:[%s2449_s2 + $0x110] sm:$0xff] }
 0xbcf   :  { %1857 = vmatpush3.msra.mxu0 %v1392_v21  ;;  %v1378_v17 = vrot.slane %v1938_v18, %v1377_v34 }
 0xbd0   :  { %1849 = vmatprep.mubr.msk.f32.mxu0 %vm52_vm0, %v1208_v41  ;;  %1858 = vmatprep.subr.mxu0 %v1939_v0  ;;  %v1385_v41 = vsub.s32 5, %v2140_v23 }
 0xbd1   :  { %1850 = vmatmul.mubr.msk.f32.gmra.mxu0 %vm52_vm0, %v1209_v42 }
 0xbd2   :  { %1860 = vmatprep.mubr.msk.f32.mxu0 %vm1946_vm3, %v1939_v0  ;;  %1859 = vmatpush3.msra.mxu0 %v1391_v22 }
 0xc8a   :  { %v1848_v43 = vpop.f32.mrf.mxu0 }
 0xc8b   :  { %v1306_v44 = vadd.f32 %v1848_v43, %v1221_v35 }
 0xc8c   :  { %v1300_v50 = vpop.f32.mrf.mxu0 }
 0xc8d   :  { %v1301_v46 = vadd.f32 %v1300_v50, %v1221_v35  ;;  %v1320_v45 = vadd.f32 %v1306_v44, %v2304_v36  ;;  %v1386_v44 = vrot.slane %v1938_v18, %v1385_v41 }
 0xc8f   :  { %v1326_v47 = vsel %vm150_vm1, %v1320_v45, 0.0  ;;  %v1319_v48 = vadd.f32 %v1301_v46, %v2307_v38 }
 0xc90   :  { %1327 = vadd.xlane.f32.xlu0 %v1326_v47 }
 0xc91   :  { %v1851_v49 = vpop.f32.mrf.mxu0  ;;  %v1323_v52 = vsel %vm150_vm1, %v1319_v48, 0.0 }
 0xc92   :  { %v1316_v53 = vadd.f32 %v1851_v49, %v1221_v35 }
 0xc93   :  { %v1310_v51 = vpop.f32.mrf.mxu0 }
 0xc94   :  { %v1311_v54 = vadd.f32 %v1310_v51, %v1221_v35  ;;  %1324 = vadd.xlane.f32.xlu0 %v1323_v52  ;;  %v1322_v57 = vadd.f32 %v1316_v53, %v2317_v8 }
 0xc96   :  { %v1321_v28 = vadd.f32 %v1311_v54, %v2315_v15  ;;  %v1332_v36 = vsel %vm150_vm1, %v1322_v57, 0.0 }
 0xc98   :  { %v1329_v55 = vsel %vm150_vm1, %v1321_v28, 0.0 }
 0xc99   :  { %1330 = vadd.xlane.f32.xlu1 %v1329_v55 }
 0xc9d   :  { %1333 = vadd.xlane.f32.xlu1 %v1332_v36 }
 0xd19   :  { %v1328_v59 = vpop.xlane.xlu0 %1327 }
 0xd1a   :  { %v1336_v38 = vmul.f32 0.03125, %v1328_v59 }
 0xd1c   :  { %v1340_v62 = vsub.f32 %v1320_v45, %v1336_v38  ;;  %v1657_v38 = vld [vmem:[%s2449_s2 + $0x118] ss:$0 sm:$0xff] }
 0xd1d   :  { %v1325_v63 = vpop.xlane.xlu0 %1324 }
 0xd1e   :  { %v1335_v60 = vmul.f32 0.03125, %v1325_v63  ;;  %v1344_v58 = vmul.f32 %v1340_v62, %v1340_v62 }
 0xd20   :  { %v1339_v1 = vsub.f32 %v1319_v48, %v1335_v60  ;;  %v1350_v56 = vsel %vm150_vm1, %v1344_v58, 0.0  ;;  %v1947_v58 = vmov 1966171168  }
 0xd21   :  { %1351 = vadd.xlane.f32.xlu0 %v1350_v56 }
 0xd22   :  { %v1331_v61 = vpop.xlane.xlu1 %1330  ;;  %v1343_v15 = vmul.f32 %v1339_v1, %v1339_v1 }
 0xd23   :  { %v1337_v2 = vmul.f32 0.03125, %v1331_v61 }
 0xd24   :  { %v1347_v4 = vsel %vm150_vm1, %v1343_v15, 0.0  ;;  %v1532_v15 = vadd.s32 8, %v2140_v23 }
 0xd25   :  { %v1341_v8 = vsub.f32 %v1321_v28, %v1337_v2  ;;  %1348 = vadd.xlane.f32.xlu0 %v1347_v4  ;;  %v1533_v2 = vadd.s32 16, %v2140_v23 }
 0xd26   :  { %v1334_v6 = vpop.xlane.xlu1 %1333 }
 0xd27   :  { %v1338_v7 = vmul.f32 0.03125, %v1334_v6  ;;  %v1345_v9 = vmul.f32 %v1341_v8, %v1341_v8  ;;  %v1539_v6 = vand.u32 7, %v2140_v23 }
 0xd29   :  { %v1342_v10 = vsub.f32 %v1322_v57, %v1338_v7  ;;  %v1353_v11 = vsel %vm150_vm1, %v1345_v9, 0.0  ;;  %v1546_v9 = vand.u32 7, %v1532_v15  ;;  %vm1583_vm7 = vcmp.eq.s32.totalorder %v1539_v6, 5 }
 0xd2a   :  { %1354 = vadd.xlane.f32.xlu1 %v1353_v11 }
 0xd2b   :  { %v1346_v12 = vmul.f32 %v1342_v10, %v1342_v10  ;;  %vm1584_vm8 = vcmp.eq.s32.totalorder %v1546_v9, 5 }
 0xd2d   :  { %v1356_v13 = vsel %vm150_vm1, %v1346_v12, 0.0 }
 0xd2e   :  { %1357 = vadd.xlane.f32.xlu1 %v1356_v13 }
 0xdaa   :  { %v1352_v24 = vpop.xlane.xlu0 %1351 }
 0xdab   :  { %v1360_v25 = vmul.f32 0.03125, %v1352_v24 }
 0xdad   :  { %v1364_v26 = vadd.f32 1e-06, %v1360_v25 }
 0xdae   :  { %v1349_v29 = vpop.xlane.xlu0 %1348 }
 0xdaf   :  { %v1359_v30 = vmul.f32 0.03125, %v1349_v29  ;;  %1928 = vrsqrt.f32 %v1364_v26 }
 0xdb1   :  { %v1363_v31 = vadd.f32 1e-06, %v1359_v30 }
 0xdb3   :  { %v1355_v32 = vpop.xlane.xlu1 %1354  ;;  %1930 = vrsqrt.f32 %v1363_v31 }
 0xdb4   :  { %v1361_v3 = vmul.f32 0.03125, %v1355_v32 }
 0xdb6   :  { %v1365_v16 = vadd.f32 1e-06, %v1361_v3 }
 0xdb7   :  { %v1358_v14 = vpop.xlane.xlu1 %1357 }
 0xdb8   :  { %1932 = vrsqrt.f32 %v1365_v16  ;;  %v1362_v33 = vmul.f32 0.03125, %v1358_v14 }
 0xdba   :  { %v1366_v5 = vadd.f32 1e-06, %v1362_v33 }
 0xdbc   :  { %1934 = vrsqrt.f32 %v1366_v5  ;;  %v1929_v0 = vpop.eup %1928 }
 0xdbd   :  { %v1372_v39 = vmul.f32 %v1929_v0, %v1340_v62 }
 0xdbf   :  { %v1380_v35 = vmul.f32 %v1378_v17, %v1372_v39 }
 0xdc0   :  { %v1931_v37 = vpop.eup %1930 }
 0xdc1   :  { %v1371_v42 = vmul.f32 %v1931_v37, %v1339_v1  ;;  %v1388_v48 = vadd.f32 %v1386_v44, %v1380_v35  ;;  %v1487_v1 = vunpack.c.l.s4 %v1947_v58 }
 0xdc3   :  { %v1379_v50 = vmul.f32 %v1378_v17, %v1371_v42  ;;  %v1403_v28 = vrot.slane %v1388_v48, 7  ;;  %v1488_v56 = vunpack.c.0.s8 %v1487_v1 }
 0xdc5   :  { %v1933_v40 = vpop.eup %1932  ;;  %v1387_v52 = vadd.f32 %v1386_v44, %v1379_v50  ;;  %v1491_v61 = vsub.s32 %v1488_v56, %v2140_v23 }
 0xdc6   :  { %v1373_v43 = vmul.f32 %v1933_v40, %v1341_v8  ;;  %v1534_v8 = vadd.s32 24, %v2140_v23 }
 0xdc7   :  { %v1405_v55 = vsel %vm1404_vm4, %v1403_v28, %v1387_v52 }
 0xdc8   :  { %v1381_v46 = vmul.f32 %v1378_v17, %v1373_v43  ;;  %v1560_v13 = vand.u32 7, %v1534_v8 }
 0xdc9   :  { %v1935_v45 = vpop.eup %1934 }
 0xdca   :  { %v1374_v47 = vmul.f32 %v1935_v45, %v1342_v10  ;;  %v1389_v49 = vadd.f32 %v1386_v44, %v1381_v46  ;;  %v1553_v10 = vand.u32 7, %v1533_v2  ;;  %vm1586_vm10 = vcmp.eq.s32.totalorder %v1560_v13, 5 }
 0xdcc   :  { %v1382_v51 = vmul.f32 %v1378_v17, %v1374_v47  ;;  %v1406_v53 = vrot.slane %v1389_v49, 6  ;;  %vm1585_vm9 = vcmp.eq.s32.totalorder %v1553_v10, 5 }
 0xdce   :  { %v1390_v54 = vadd.f32 %v1386_v44, %v1382_v51  ;;  %v1408_v36 = vsel %vm1407_vm5, %v1406_v53, %v1405_v55 }
 0xdd0   :  { %v1409_v57 = vrot.slane %v1390_v54, 5 }
 0xdd2   :  { %v1411_v59 = vsel %vm1410_vm6, %v1409_v57, %v1408_v36 }
 0xdd3   :  { %1861 = vmatmul.mubr.msk.f32.vlgmr.msra.gmra.mxu0 %vm150_vm1, %v1411_v59 }
 0xe93   :  { %v1480_v62 = vpop.f32.mrf.mxu0 }
 0xe94   :  { %v1481_v63 = vadd.f32 %v1657_v38, %v1480_v62 }
 0xe95   :  { %v1862_v60 = vpop.f32.mrf.mxu0 }
 0xe96   :  { %1936 = vtanh.f32 %v1481_v63 }
 0xea3   :  { %v1937_v4 = vpop.eup %1936 }
 0xea4   :  { %v1492_v7 = vrot.slane %v1937_v4, %v1491_v61 }
 0xea6   :  { %v1493_v11 = vcombine.high %v1492_v7, %v1492_v7  ;;  %v1500_v12 = vrot.slane %v1492_v7, %v1491_v61 }
 0xea8   :  { %v1507_v19 = vrot.slane %v1493_v11, %v1491_v61  ;;  %v1508_v20 = vcombine.high %v1500_v12, %v1500_v12  ;;  %v1513_v21 = vrot.slane %v1500_v12, %v2143_v27 }
 0xeaa   :  { %v1509_v22 = vcombine.high %v1507_v19, %v1507_v19  ;;  %v1517_v24 = vrot.slane %v1507_v19, %v2143_v27  ;;  %v1521_v25 = vrot.slane %v1508_v20, %v2143_v27  ;;  %v1595_v26 = vsel %vm1583_vm7, %v1513_v21, %v1387_v52 }
 0xeab   :  { %v1599_v23 = vsel %vm150_vm1, %v1595_v26, 0.0 }
 0xeac   :  { %v1525_v29 = vrot.slane %v1509_v22, %v2143_v27  ;;  %v1596_v30 = vsel %vm1584_vm8, %v1517_v24, %v1388_v48  ;;  %v1597_v31 = vsel %vm1585_vm9, %v1521_v25, %v1389_v49  ;;  %1603 = vst [vmem:[%s2450_s3] sm:$0xff] %v1599_v23 }
 0xead   :  { %v1600_v32 = vsel %vm150_vm1, %v1596_v30, 0.0  ;;  %v1601_v3 = vsel %vm150_vm1, %v1597_v31, 0.0 }
 0xeae   :  { %v1598_v16 = vsel %vm1586_vm10, %v1525_v29, %v1390_v54  ;;  %1604 = vst [vmem:[%s2450_s3 + $0x8] sm:$0xff] %v1600_v32  ;;  %1605 = vst [vmem:[%s2450_s3 + $0x10] sm:$0xff] %v1601_v3 }
 0xeaf   :  { %v1602_v27 = vsel %vm150_vm1, %v1598_v16, 0.0 }
 0xeb0   :  { %1606 = vst [vmem:[%s2450_s3 + $0x18] sm:$0xff] %v1602_v27 }

</bundles_post_ra>
